<compile_context>
chip_gen: v7x
topology: tpu7x:2x2x1
jax: 0.10.0
libtpu: 0.0.40
codegen_flags: <defaults>
</compile_context>

<pallas_src>
import math

import jax
import jax.numpy as jnp
from jax.experimental import pallas as pl
from jax.experimental.pallas import tpu as pltpu

EMB_SIZE = 32                                  # hidden size of the (synthetic) LM
HIDDEN_DIMS = [1024, 512, 256, 128, 64, 2]     # fixed by the module definition
OUT_PAD = 128                                  # final matmul padded to 128 lanes


def _round_up(x, m):
    return ((x + m - 1) // m) * m


def _tm_max():
    """Per-generation batch tile ceiling.

    v5e: 128-deep MXU at ~197 TF/s — 512 rows already hides step overhead.
    v6e/v7x: 256-deep MXU at ~1 PF/s — want 1024 rows to amortize step cost.
    """
    try:
        kind = jax.devices()[0].device_kind.lower()
    except Exception:
        kind = ""
    return 512 if "v5" in kind else 1024


def _mlp_kernel(x_ref,
                w1_ref, b1_ref,
                w2_ref, b2_ref,
                w3_ref, b3_ref,
                w4_ref, b4_ref,
                w5_ref, b5_ref,
                w6_ref, b6_ref,
                out_ref):
    """Fused 6-layer MLP head on one (TM, EMB) batch tile.

    Weights are bf16 (VMEM-resident across the batch grid); matmuls accumulate
    in f32 on the MXU; bias add + ReLU stay in f32 on the VPU. Only the real
    2 logit columns are stored.
    """
    h = x_ref[...]  # (TM, EMB); f32 (or bf16 if upstream already emits bf16)

    def dense(h_in, w_ref, b_ref, relu=True):
        y = jnp.dot(h_in.astype(jnp.bfloat16), w_ref[...],
                    preferred_element_type=jnp.float32) + b_ref[...]
        return jnp.maximum(y, 0.0) if relu else y

    h = dense(h, w1_ref, b1_ref)
    h = dense(h, w2_ref, b2_ref)
    h = dense(h, w3_ref, b3_ref)
    h = dense(h, w4_ref, b4_ref)
    h = dense(h, w5_ref, b5_ref)
    y = dense(h, w6_ref, b6_ref, relu=False)          # (TM, OUT_PAD) f32
    out_ref[...] = y[:, :out_ref.shape[1]]            # store only real logits


def discriminator_head(embeddings, params):
    """Run the fused MLP head Pallas kernel.

    embeddings: (num_node, emb_size) float32 (bf16 also accepted)
    params: list of (W, b) with W: (in, out) bf16, b: (1, out) f32
    Returns logits (num_node, 2) float32.
    """
    num_node, emb = embeddings.shape

    # Batch tile: as big as the per-generation ceiling allows, but capped at
    # ~half the batch (rounded to the 8-row sublane granule) so the grid keeps
    # >= 2 steps for v7x 2-TC sharding whenever the batch allows it.
    tm_max = _tm_max()
    half = _round_up(-(-num_node // 2), 8)
    tm = max(8, min(tm_max, half))
    grid = (pl.cdiv(num_node, tm),)

    # Zero-pad the 2-wide final layer to 128 lanes (lane-aligned final matmul).
    w6, b6 = params[-1]
    out_true = w6.shape[1]
    w6p = jnp.pad(w6, ((0, 0), (0, OUT_PAD - out_true)))
    b6p = jnp.pad(b6, ((0, 0), (0, OUT_PAD - out_true)))
    layers = list(params[:-1]) + [(w6p, b6p)]

    flat_args = [embeddings]
    in_specs = [pl.BlockSpec((tm, emb), lambda i: (i, 0))]
    for w, b in layers:
        flat_args += [w, b]
        # Constant index_map -> block never changes; single-buffer it so the
        # pipeliner neither duplicates it in VMEM nor schedules redundant DMAs.
        in_specs += [
            pl.BlockSpec(w.shape, lambda i: (0, 0), pipeline_mode=pl.Buffered(1)),
            pl.BlockSpec(b.shape, lambda i: (0, 0), pipeline_mode=pl.Buffered(1)),
        ]

    flops = 2 * num_node * sum(int(w.shape[0]) * int(w.shape[1]) for w, _ in layers)
    bytes_accessed = int(
        embeddings.size * embeddings.dtype.itemsize          # x in
        + num_node * out_true * 4                            # logits out
        + sum(int(w.size) * w.dtype.itemsize + int(b.size) * b.dtype.itemsize
              for w, b in layers))                           # weights/biases

    out = pl.pallas_call(
        _mlp_kernel,
        out_shape=jax.ShapeDtypeStruct((num_node, out_true), jnp.float32),
        grid=grid,
        in_specs=in_specs,
        # Block last-dim (2) equals the full array dim -> legal; masked store
        # cost lands on the (idle) store slot instead of 64x extra HBM traffic.
        out_specs=pl.BlockSpec((tm, out_true), lambda i: (i, 0)),
        compiler_params=pltpu.CompilerParams(
            dimension_semantics=("parallel",)),   # 2-TC sharding on v7x
        cost_estimate=pl.CostEstimate(flops=flops, transcendentals=0,
                                      bytes_accessed=bytes_accessed),
    )(*flat_args)
    return out


def init_params(key, emb_size):
    """nn.Linear-style init; weights stored transposed (in, out) and as bf16."""
    dims = [emb_size] + HIDDEN_DIMS
    params = []
    for i in range(len(HIDDEN_DIMS)):
        key, kw, kb = jax.random.split(key, 3)
        bound = 1.0 / math.sqrt(dims[i])
        w = jax.random.uniform(kw, (dims[i], dims[i + 1]),
                               minval=-bound, maxval=bound,
                               dtype=jnp.float32).astype(jnp.bfloat16)
        b = jax.random.uniform(kb, (1, dims[i + 1]),
                               minval=-bound, maxval=bound, dtype=jnp.float32)
        params.append((w, b))
    return params


def metaphysical_event_discriminator_forward(hidden_states, params):
    """Forward pass of MetaphysicalEventDiscriminator.

    hidden_states: (num_node, seq_len, emb_size) — stand-in for AutoModel output.
    Returns logits of shape (num_node, 2).
    """
    # get_lm_embedding (non-bart branch): sentence_representation = outputs[0][:, 0, :]
    embeddings = hidden_states[:, 0, :]          # (num_node, emb_size)
    return discriminator_head(embeddings, params)


def ref_forward(hidden_states, params):
    """Pure-JAX reference mirroring the kernel's bf16-matmul / f32-accumulate math."""
    x = hidden_states[:, 0, :]
    for i, (w, b) in enumerate(params):
        y = jnp.dot(x.astype(jnp.bfloat16), w,
                    preferred_element_type=jnp.float32) + b
        x = jnp.maximum(y, 0.0) if i < len(params) - 1 else y
    return x


if __name__ == "__main__":
    key = jax.random.PRNGKey(0)
    k_params, k_hidden = jax.random.split(key)

    num_node, seq_len = 8, 8
    params = init_params(k_params, EMB_SIZE)

    # Synthetic LM output hidden states (num_node, seq_len, emb_size).
    hidden_states = jax.random.normal(k_hidden, (num_node, seq_len, EMB_SIZE),
                                      dtype=jnp.float32)

    logits = metaphysical_event_discriminator_forward(hidden_states, params)
    logits = jax.block_until_ready(logits)

    ref = ref_forward(hidden_states, params)
    assert logits.shape == (num_node, 2)
    assert jnp.allclose(logits, ref, atol=1e-2, rtol=1e-2)

    print("KERNEL_OK")
</pallas_src>

<mosaic_0001>
module attributes {stable_mosaic.version = 11 : i64} {
  func.func @_mlp_kernel(%arg0: i32, %arg1: memref<8x32xf32, #tpu.memory_space<vmem>>, %arg2: memref<32x1024xbf16, #tpu.memory_space<vmem>>, %arg3: memref<1x1024xf32, #tpu.memory_space<vmem>>, %arg4: memref<1024x512xbf16, #tpu.memory_space<vmem>>, %arg5: memref<1x512xf32, #tpu.memory_space<vmem>>, %arg6: memref<512x256xbf16, #tpu.memory_space<vmem>>, %arg7: memref<1x256xf32, #tpu.memory_space<vmem>>, %arg8: memref<256x128xbf16, #tpu.memory_space<vmem>>, %arg9: memref<1x128xf32, #tpu.memory_space<vmem>>, %arg10: memref<128x64xbf16, #tpu.memory_space<vmem>>, %arg11: memref<1x64xf32, #tpu.memory_space<vmem>>, %arg12: memref<64x128xbf16, #tpu.memory_space<vmem>>, %arg13: memref<1x128xf32, #tpu.memory_space<vmem>>, %arg14: memref<8x2xf32, #tpu.memory_space<vmem>>) attributes {dimension_semantics = [#tpu.dimension_semantics<parallel>], iteration_bounds = array<i64: 1>, scalar_prefetch = 0 : i64, scratch_operands = 0 : i64, tpu.core_type = #tpu.core_type<tc>, window_params = [{transform_indices = @transform_0, window_bounds = array<i64: 8, 32>}, {pipeline_mode = #tpu.pipeline_mode<synchronous>, transform_indices = @transform_1, window_bounds = array<i64: 32, 1024>}, {pipeline_mode = #tpu.pipeline_mode<synchronous>, transform_indices = @transform_2, window_bounds = array<i64: 1, 1024>}, {pipeline_mode = #tpu.pipeline_mode<synchronous>, transform_indices = @transform_3, window_bounds = array<i64: 1024, 512>}, {pipeline_mode = #tpu.pipeline_mode<synchronous>, transform_indices = @transform_4, window_bounds = array<i64: 1, 512>}, {pipeline_mode = #tpu.pipeline_mode<synchronous>, transform_indices = @transform_5, window_bounds = array<i64: 512, 256>}, {pipeline_mode = #tpu.pipeline_mode<synchronous>, transform_indices = @transform_6, window_bounds = array<i64: 1, 256>}, {pipeline_mode = #tpu.pipeline_mode<synchronous>, transform_indices = @transform_7, window_bounds = array<i64: 256, 128>}, {pipeline_mode = #tpu.pipeline_mode<synchronous>, transform_indices = @transform_8, window_bounds = array<i64: 1, 128>}, {pipeline_mode = #tpu.pipeline_mode<synchronous>, transform_indices = @transform_9, window_bounds = array<i64: 128, 64>}, {pipeline_mode = #tpu.pipeline_mode<synchronous>, transform_indices = @transform_10, window_bounds = array<i64: 1, 64>}, {pipeline_mode = #tpu.pipeline_mode<synchronous>, transform_indices = @transform_11, window_bounds = array<i64: 64, 128>}, {pipeline_mode = #tpu.pipeline_mode<synchronous>, transform_indices = @transform_12, window_bounds = array<i64: 1, 128>}, {transform_indices = @transform_13, window_bounds = array<i64: 8, 2>}]} {
    %c0 = arith.constant 0 : index
    %c0_0 = arith.constant 0 : index
    %0 = vector.load %arg1[%c0, %c0_0] : memref<8x32xf32, #tpu.memory_space<vmem>>, vector<8x32xf32>
    %1 = arith.truncf %0 : vector<8x32xf32> to vector<8x32xbf16>
    %c0_1 = arith.constant 0 : index
    %c0_2 = arith.constant 0 : index
    %2 = vector.load %arg2[%c0_1, %c0_2] : memref<32x1024xbf16, #tpu.memory_space<vmem>>, vector<32x1024xbf16>
    %cst = arith.constant dense<0.000000e+00> : vector<8x1024xf32>
    %3 = tpu.matmul %1, %2, %cst {dimension_numbers = #tpu.dot_dimension_numbers<[1], [0], [0], [1], [0, 0, 1, 1], [], []>} : vector<8x32xbf16>, vector<32x1024xbf16>, vector<8x1024xf32> -> vector<8x1024xf32>
    %c0_3 = arith.constant 0 : index
    %c0_4 = arith.constant 0 : index
    %4 = vector.load %arg3[%c0_3, %c0_4] : memref<1x1024xf32, #tpu.memory_space<vmem>>, vector<1x1024xf32>
    %5 = vector.broadcast %4 : vector<1x1024xf32> to vector<8x1024xf32>
    %6 = arith.addf %3, %5 : vector<8x1024xf32>
    %cst_5 = arith.constant 0.000000e+00 : f32
    %7 = vector.broadcast %cst_5 : f32 to vector<8x1024xf32>
    %8 = arith.maximumf %6, %7 : vector<8x1024xf32>
    %9 = arith.truncf %8 : vector<8x1024xf32> to vector<8x1024xbf16>
    %c0_6 = arith.constant 0 : index
    %c0_7 = arith.constant 0 : index
    %10 = vector.load %arg4[%c0_6, %c0_7] : memref<1024x512xbf16, #tpu.memory_space<vmem>>, vector<1024x512xbf16>
    %cst_8 = arith.constant dense<0.000000e+00> : vector<8x512xf32>
    %11 = tpu.matmul %9, %10, %cst_8 {dimension_numbers = #tpu.dot_dimension_numbers<[1], [0], [0], [1], [0, 0, 1, 1], [], []>} : vector<8x1024xbf16>, vector<1024x512xbf16>, vector<8x512xf32> -> vector<8x512xf32>
    %c0_9 = arith.constant 0 : index
    %c0_10 = arith.constant 0 : index
    %12 = vector.load %arg5[%c0_9, %c0_10] : memref<1x512xf32, #tpu.memory_space<vmem>>, vector<1x512xf32>
    %13 = vector.broadcast %12 : vector<1x512xf32> to vector<8x512xf32>
    %14 = arith.addf %11, %13 : vector<8x512xf32>
    %cst_11 = arith.constant 0.000000e+00 : f32
    %15 = vector.broadcast %cst_11 : f32 to vector<8x512xf32>
    %16 = arith.maximumf %14, %15 : vector<8x512xf32>
    %17 = arith.truncf %16 : vector<8x512xf32> to vector<8x512xbf16>
    %c0_12 = arith.constant 0 : index
    %c0_13 = arith.constant 0 : index
    %18 = vector.load %arg6[%c0_12, %c0_13] : memref<512x256xbf16, #tpu.memory_space<vmem>>, vector<512x256xbf16>
    %cst_14 = arith.constant dense<0.000000e+00> : vector<8x256xf32>
    %19 = tpu.matmul %17, %18, %cst_14 {dimension_numbers = #tpu.dot_dimension_numbers<[1], [0], [0], [1], [0, 0, 1, 1], [], []>} : vector<8x512xbf16>, vector<512x256xbf16>, vector<8x256xf32> -> vector<8x256xf32>
    %c0_15 = arith.constant 0 : index
    %c0_16 = arith.constant 0 : index
    %20 = vector.load %arg7[%c0_15, %c0_16] : memref<1x256xf32, #tpu.memory_space<vmem>>, vector<1x256xf32>
    %21 = vector.broadcast %20 : vector<1x256xf32> to vector<8x256xf32>
    %22 = arith.addf %19, %21 : vector<8x256xf32>
    %cst_17 = arith.constant 0.000000e+00 : f32
    %23 = vector.broadcast %cst_17 : f32 to vector<8x256xf32>
    %24 = arith.maximumf %22, %23 : vector<8x256xf32>
    %25 = arith.truncf %24 : vector<8x256xf32> to vector<8x256xbf16>
    %c0_18 = arith.constant 0 : index
    %c0_19 = arith.constant 0 : index
    %26 = vector.load %arg8[%c0_18, %c0_19] : memref<256x128xbf16, #tpu.memory_space<vmem>>, vector<256x128xbf16>
    %cst_20 = arith.constant dense<0.000000e+00> : vector<8x128xf32>
    %27 = tpu.matmul %25, %26, %cst_20 {dimension_numbers = #tpu.dot_dimension_numbers<[1], [0], [0], [1], [0, 0, 1, 1], [], []>} : vector<8x256xbf16>, vector<256x128xbf16>, vector<8x128xf32> -> vector<8x128xf32>
    %c0_21 = arith.constant 0 : index
    %c0_22 = arith.constant 0 : index
    %28 = vector.load %arg9[%c0_21, %c0_22] : memref<1x128xf32, #tpu.memory_space<vmem>>, vector<1x128xf32>
    %29 = vector.broadcast %28 : vector<1x128xf32> to vector<8x128xf32>
    %30 = arith.addf %27, %29 : vector<8x128xf32>
    %cst_23 = arith.constant 0.000000e+00 : f32
    %31 = vector.broadcast %cst_23 : f32 to vector<8x128xf32>
    %32 = arith.maximumf %30, %31 : vector<8x128xf32>
    %33 = arith.truncf %32 : vector<8x128xf32> to vector<8x128xbf16>
    %c0_24 = arith.constant 0 : index
    %c0_25 = arith.constant 0 : index
    %34 = vector.load %arg10[%c0_24, %c0_25] : memref<128x64xbf16, #tpu.memory_space<vmem>>, vector<128x64xbf16>
    %cst_26 = arith.constant dense<0.000000e+00> : vector<8x64xf32>
    %35 = tpu.matmul %33, %34, %cst_26 {dimension_numbers = #tpu.dot_dimension_numbers<[1], [0], [0], [1], [0, 0, 1, 1], [], []>} : vector<8x128xbf16>, vector<128x64xbf16>, vector<8x64xf32> -> vector<8x64xf32>
    %c0_27 = arith.constant 0 : index
    %c0_28 = arith.constant 0 : index
    %36 = vector.load %arg11[%c0_27, %c0_28] : memref<1x64xf32, #tpu.memory_space<vmem>>, vector<1x64xf32>
    %37 = vector.broadcast %36 : vector<1x64xf32> to vector<8x64xf32>
    %38 = arith.addf %35, %37 : vector<8x64xf32>
    %cst_29 = arith.constant 0.000000e+00 : f32
    %39 = vector.broadcast %cst_29 : f32 to vector<8x64xf32>
    %40 = arith.maximumf %38, %39 : vector<8x64xf32>
    %41 = arith.truncf %40 : vector<8x64xf32> to vector<8x64xbf16>
    %c0_30 = arith.constant 0 : index
    %c0_31 = arith.constant 0 : index
    %42 = vector.load %arg12[%c0_30, %c0_31] : memref<64x128xbf16, #tpu.memory_space<vmem>>, vector<64x128xbf16>
    %cst_32 = arith.constant dense<0.000000e+00> : vector<8x128xf32>
    %43 = tpu.matmul %41, %42, %cst_32 {dimension_numbers = #tpu.dot_dimension_numbers<[1], [0], [0], [1], [0, 0, 1, 1], [], []>} : vector<8x64xbf16>, vector<64x128xbf16>, vector<8x128xf32> -> vector<8x128xf32>
    %c0_33 = arith.constant 0 : index
    %c0_34 = arith.constant 0 : index
    %44 = vector.load %arg13[%c0_33, %c0_34] : memref<1x128xf32, #tpu.memory_space<vmem>>, vector<1x128xf32>
    %45 = vector.broadcast %44 : vector<1x128xf32> to vector<8x128xf32>
    %46 = arith.addf %43, %45 : vector<8x128xf32>
    %47 = vector.extract_strided_slice %46 {offsets = [0, 0], sizes = [8, 2], strides = [1, 1]} : vector<8x128xf32> to vector<8x2xf32>
    %c0_35 = arith.constant 0 : index
    %c0_36 = arith.constant 0 : index
    %48 = vector.load %arg14[%c0_35, %c0_36] : memref<8x2xf32, #tpu.memory_space<vmem>>, vector<8x2xf32>
    tpu.vector_store %arg14[%c0_35, %c0_36], %47 {strides = array<i32>} : memref<8x2xf32, #tpu.memory_space<vmem>>, vector<8x2xf32>,
    return
  }
  func.func @transform_0(%arg0: i32) -> (i32, i32) {
    %c0_i32 = arith.constant 0 : i32
    %c0_i32_0 = arith.constant 0 : i32
    return %arg0, %c0_i32 : i32, i32
  }
  func.func @transform_1(%arg0: i32) -> (i32, i32) {
    %c0_i32 = arith.constant 0 : i32
    %c0_i32_0 = arith.constant 0 : i32
    %c0_i32_1 = arith.constant 0 : i32
    return %c0_i32, %c0_i32_0 : i32, i32
  }
  func.func @transform_2(%arg0: i32) -> (i32, i32) {
    %c0_i32 = arith.constant 0 : i32
    %c0_i32_0 = arith.constant 0 : i32
    %c0_i32_1 = arith.constant 0 : i32
    return %c0_i32, %c0_i32_0 : i32, i32
  }
  func.func @transform_3(%arg0: i32) -> (i32, i32) {
    %c0_i32 = arith.constant 0 : i32
    %c0_i32_0 = arith.constant 0 : i32
    %c0_i32_1 = arith.constant 0 : i32
    return %c0_i32, %c0_i32_0 : i32, i32
  }
  func.func @transform_4(%arg0: i32) -> (i32, i32) {
    %c0_i32 = arith.constant 0 : i32
    %c0_i32_0 = arith.constant 0 : i32
    %c0_i32_1 = arith.constant 0 : i32
    return %c0_i32, %c0_i32_0 : i32, i32
  }
  func.func @transform_5(%arg0: i32) -> (i32, i32) {
    %c0_i32 = arith.constant 0 : i32
    %c0_i32_0 = arith.constant 0 : i32
    %c0_i32_1 = arith.constant 0 : i32
    return %c0_i32, %c0_i32_0 : i32, i32
  }
  func.func @transform_6(%arg0: i32) -> (i32, i32) {
    %c0_i32 = arith.constant 0 : i32
    %c0_i32_0 = arith.constant 0 : i32
    %c0_i32_1 = arith.constant 0 : i32
    return %c0_i32, %c0_i32_0 : i32, i32
  }
  func.func @transform_7(%arg0: i32) -> (i32, i32) {
    %c0_i32 = arith.constant 0 : i32
    %c0_i32_0 = arith.constant 0 : i32
    %c0_i32_1 = arith.constant 0 : i32
    return %c0_i32, %c0_i32_0 : i32, i32
  }
  func.func @transform_8(%arg0: i32) -> (i32, i32) {
    %c0_i32 = arith.constant 0 : i32
    %c0_i32_0 = arith.constant 0 : i32
    %c0_i32_1 = arith.constant 0 : i32
    return %c0_i32, %c0_i32_0 : i32, i32
  }
  func.func @transform_9(%arg0: i32) -> (i32, i32) {
    %c0_i32 = arith.constant 0 : i32
    %c0_i32_0 = arith.constant 0 : i32
    %c0_i32_1 = arith.constant 0 : i32
    return %c0_i32, %c0_i32_0 : i32, i32
  }
  func.func @transform_10(%arg0: i32) -> (i32, i32) {
    %c0_i32 = arith.constant 0 : i32
    %c0_i32_0 = arith.constant 0 : i32
    %c0_i32_1 = arith.constant 0 : i32
    return %c0_i32, %c0_i32_0 : i32, i32
  }
  func.func @transform_11(%arg0: i32) -> (i32, i32) {
    %c0_i32 = arith.constant 0 : i32
    %c0_i32_0 = arith.constant 0 : i32
    %c0_i32_1 = arith.constant 0 : i32
    return %c0_i32, %c0_i32_0 : i32, i32
  }
  func.func @transform_12(%arg0: i32) -> (i32, i32) {
    %c0_i32 = arith.constant 0 : i32
    %c0_i32_0 = arith.constant 0 : i32
    %c0_i32_1 = arith.constant 0 : i32
    return %c0_i32, %c0_i32_0 : i32, i32
  }
  func.func @transform_13(%arg0: i32) -> (i32, i32) {
    %c0_i32 = arith.constant 0 : i32
    %c0_i32_0 = arith.constant 0 : i32
    return %arg0, %c0_i32 : i32, i32
  }
}

</mosaic_0001>

<bundles_post_ra>
// kernel: tpu_custom_call.1
= control target key start
LH: loop header
LB: loop body
LE: loop exit
PB: predicated region body
PF: predicated region fallthrough
CT: control target
= control target key end

     0   :  { %18 = vsyncpa [#allocation3], 0  ;;  %s4542_s0 = inlined_call_operand.vmem [shape: f32[8,32], index: 0, kind: input, shape index: {}]   ;;  %s4543_s1 = inlined_call_operand.hbm [shape: bf16[32,1024], index: 1, kind: input, shape index: {}]   ;;  %s4544_s2 = inlined_call_operand.vmem [shape: f32[1,1024], index: 2, kind: input, shape index: {}]   ;;  %s4545_s3 = inlined_call_operand.hbm [shape: bf16[1024,512], index: 3, kind: input, shape index: {}]   ;;  %s4546_s4 = inlined_call_operand.vmem [shape: f32[1,512], index: 4, kind: input, shape index: {}]   ;;  %s4547_s5 = inlined_call_operand.hbm [shape: bf16[512,256], index: 5, kind: input, shape index: {}]   ;;  %s4548_s6 = inlined_call_operand.vmem [shape: f32[1,256], index: 6, kind: input, shape index: {}]   ;;  %s4549_s7 = inlined_call_operand.hbm [shape: bf16[256,128], index: 7, kind: input, shape index: {}]   ;;  %s4550_s8 = inlined_call_operand.vmem [shape: f32[1,128], index: 8, kind: input, shape index: {}]   ;;  %s4551_s9 = inlined_call_operand.vmem [shape: bf16[128,64], index: 9, kind: input, shape index: {}]   ;;  %s4552_s10 = inlined_call_operand.vmem [shape: f32[1,64], index: 10, kind: input, shape index: {}]   ;;  %s4553_s11 = inlined_call_operand.vmem [shape: bf16[64,128], index: 11, kind: input, shape index: {}]   ;;  %s4554_s12 = inlined_call_operand.vmem [shape: f32[1,128], index: 12, kind: input, shape index: {}]   ;;  %s4555_s13 = inlined_call_operand.vmem [shape: f32[8,2], index: 13, kind: output, shape index: {}]  }
   0x1   :  { %19 = vsyncpa [#allocation5], 0 }
   0x2   :  { %20 = vsyncpa [#allocation8], 0  ;;  %s4273_s25 = smov [#allocation4]   ;;  %s4179_s29 = scalar_lea.hbm %s4545_s3, 32768 }
   0x3   :  { %s42_s26 = sshll.u32 %s4273_s25, 4  ;;  %p4180_p0 = scmp.ne.s32.totalorder %s4545_s3, %s4179_s29  ;;  %s43_s26 = int_to_ptr.vmem [resolvable:$true] %s42_s26 }
   0x4   :  { %p4183_p1 = scmp.lt.u32.totalorder %s4179_s29, %s4545_s3 }
   0x6   :  { %p4185_p2 = pnand %p4183_p1, %p4180_p0 }
   0x8   :  { %4188 = shalt.err (!%p4185_p2)
}
   0x9   :  { %s4189_s17 = scalar_lea.vmem %s43_s26, 32768  ;;  %p4194_p4 = scmp.lt.s32.totalorder %s43_s26, %s43_s26 }
   0xa   :  { %p4190_p3 = scmp.ne.s32.totalorder %s43_s26, %s4189_s17  ;;  %p4195_p5 = scmp.lt.s32.totalorder %s4189_s17, %s4189_s17 }
   0xc   :  { %p4196_p6 = por %p4195_p5, %p4194_p4 }
   0xe   :  { %p4197_p7 = pnand %p4196_p6, %p4190_p3 }
  0x10   :  { %4200 = shalt.err (!%p4197_p7)
}
  0x11   :  { %s4274_s18 = smov 256   ;;  %s4275_s19 = smov 16  }
  0x12   :  { %48 = dma.hbm_to_vmem [thread:$0]  %s4545_s3, 32768, %s43_s26, [#allocation5], %s4274_s18, %s4274_s18, %s4275_s19  }
  0x13   :  { %s4276_s22 = smov [#allocation2]   ;;  %s4201_s27 = scalar_lea.hbm %s4543_s1, 2048 }
  0x14   :  { %s28_s23 = sshll.u32 %s4276_s22, 4  ;;  %p4202_p8 = scmp.ne.s32.totalorder %s4543_s1, %s4201_s27  ;;  %s29_s23 = int_to_ptr.vmem [resolvable:$true] %s28_s23 }
  0x15   :  { %p4205_p9 = scmp.lt.u32.totalorder %s4201_s27, %s4543_s1 }
  0x17   :  { %p4207_p10 = pnand %p4205_p9, %p4202_p8 }
  0x19   :  { %4210 = shalt.err (!%p4207_p10)
}
  0x1a   :  { %s4211_s15 = scalar_lea.vmem %s29_s23, 2048  ;;  %p4216_p12 = scmp.lt.s32.totalorder %s29_s23, %s29_s23 }
  0x1b   :  { %p4212_p11 = scmp.ne.s32.totalorder %s29_s23, %s4211_s15  ;;  %p4217_p13 = scmp.lt.s32.totalorder %s4211_s15, %s4211_s15 }
  0x1d   :  { %p4218_p0 = por %p4217_p13, %p4216_p12 }
  0x1f   :  { %p4219_p1 = pnand %p4218_p0, %p4212_p11 }
  0x21   :  { %4222 = shalt.err (!%p4219_p1)
}
  0x22   :  { %s4277_s3 = smov 512   ;;  %s4278_s26 = smov 32  }
  0x23   :  { %34 = dma.hbm_to_vmem [thread:$0]  %s4543_s1, 2048, %s29_s23, [#allocation3], %s4277_s3, %s4277_s3, %s4278_s26  }
  0x24   :  { %s4279_s18 = smov [#allocation6]   ;;  %s4223_s22 = scalar_lea.hbm %s4547_s5, 8192 }
  0x25   :  { %s56_s19 = sshll.u32 %s4279_s18, 4  ;;  %p4224_p2 = scmp.ne.s32.totalorder %s4547_s5, %s4223_s22  ;;  %s57_s19 = int_to_ptr.vmem [resolvable:$true] %s56_s19 }
  0x26   :  { %p4227_p3 = scmp.lt.u32.totalorder %s4223_s22, %s4547_s5 }
  0x28   :  { %p4229_p4 = pnand %p4227_p3, %p4224_p2 }
  0x2a   :  { %4232 = shalt.err (!%p4229_p4)
}
  0x2b   :  { %s4233_s29 = scalar_lea.vmem %s57_s19, 8192  ;;  %p4238_p6 = scmp.lt.s32.totalorder %s57_s19, %s57_s19 }
  0x2c   :  { %p4234_p5 = scmp.ne.s32.totalorder %s57_s19, %s4233_s29  ;;  %p4239_p7 = scmp.lt.s32.totalorder %s4233_s29, %s4233_s29 }
  0x2e   :  { %p4240_p8 = por %p4239_p7, %p4238_p6 }
  0x30   :  { %p4241_p9 = pnand %p4240_p8, %p4234_p5 }
  0x32   :  { %4244 = shalt.err (!%p4241_p9)
}
  0x33   :  { %s4280_s1 = smov 128   ;;  %s4281_s23 = smov 8  }
  0x34   :  { %62 = dma.hbm_to_vmem [thread:$0]  %s4547_s5, 8192, %s57_s19, [#allocation5], %s4280_s1, %s4280_s1, %s4281_s23  }
  0x35   :  { %s4282_s15 = smov [#allocation7]   ;;  %s4245_s17 = scalar_lea.hbm %s4549_s7, 2048 }
  0x36   :  { %s70_s3 = sshll.u32 %s4282_s15, 4  ;;  %p4246_p10 = scmp.ne.s32.totalorder %s4549_s7, %s4245_s17  ;;  %s71_s3 = int_to_ptr.vmem [resolvable:$true] %s70_s3 }
  0x37   :  { %p4249_p11 = scmp.lt.u32.totalorder %s4245_s17, %s4549_s7 }
  0x39   :  { %p4251_p12 = pnand %p4249_p11, %p4246_p10 }
  0x3b   :  { %4254 = shalt.err (!%p4251_p12)
}
  0x3c   :  { %s4255_s24 = scalar_lea.vmem %s71_s3, 2048  ;;  %p4260_p0 = scmp.lt.s32.totalorder %s71_s3, %s71_s3 }
  0x3d   :  { %p4256_p13 = scmp.ne.s32.totalorder %s71_s3, %s4255_s24  ;;  %p4261_p1 = scmp.lt.s32.totalorder %s4255_s24, %s4255_s24 }
  0x3f   :  { %p4262_p2 = por %p4261_p1, %p4260_p0 }
  0x41   :  { %p4263_p3 = pnand %p4262_p2, %p4256_p13 }
  0x43   :  { %4266 = shalt.err (!%p4263_p3)
}
  0x44   :  { %s4283_s5 = smov 64   ;;  %s4284_s19 = smov 4  }
  0x45   :  { %76 = dma.hbm_to_vmem [thread:$0]  %s4549_s7, 2048, %s71_s3, [#allocation8], %s4283_s5, %s4283_s5, %s4284_s19  }
  0x46   :  { %4267 = dma.done.wait [#allocation3], 2048  }
  0x47   :  { %4268 = vsyncadd [#allocation3], 4294965248 }
  0x48   :  { %4269 = dma.done.wait [#allocation5], 40960  }
  0x49   :  { %4270 = vsyncadd [#allocation5], 4294926336 }
  0x4a   :  { %4271 = dma.done.wait [#allocation8], 2048  }
  0x4b   :  { %4272 = vsyncadd [#allocation8], 4294965248  ;;  %v4285_v0 = vmov 0   ;;  %v102_v1 = vld [vmem:[#allocation2] sm:$0xff]  ;;  %v103_v8 = vld [vmem:[#allocation2 + $0x8] sm:$0xff]  ;;  %vm240_vm0 = vcmask 261120  }
  0x4c   :  { %276 = vmatprep.mubr.bf16.mxu1 %v4285_v0  ;;  %v106_v2 = vld [vmem:[#allocation2 + $0x20] sm:$0xff]  ;;  %v107_v9 = vld [vmem:[#allocation2 + $0x28] sm:$0xff]  ;;  %v104_v21 = vld [vmem:[#allocation2 + $0x10] sm:$0xff]  ;;  %vm4287_vm1 = vmmov 0   ;;  %vm3129_vm2 = vcmask 523264   ;;  %vm3173_vm3 = vcmask 15360  }
  0x4d   :  { %v110_v3 = vld [vmem:[#allocation2 + $0x40] sm:$0xff]  ;;  %v3183_v4 = vcombine.high %v102_v1, %v106_v2  ;;  %v3182_v5 = vcombine.low %v102_v1, %v106_v2  ;;  %v3185_v12 = vcombine.high %v103_v8, %v107_v9  ;;  %v111_v13 = vld [vmem:[#allocation2 + $0x48] sm:$0xff]  ;;  %v3184_v17 = vcombine.low %v103_v8, %v107_v9  ;;  %v108_v22 = vld [vmem:[#allocation2 + $0x30] sm:$0xff] }
  0x4e   :  { %v114_v6 = vld [vmem:[#allocation2 + $0x60] sm:$0xff]  ;;  %v115_v14 = vld [vmem:[#allocation2 + $0x68] sm:$0xff]  ;;  %v3187_v26 = vcombine.high %v104_v21, %v108_v22  ;;  %v112_v27 = vld [vmem:[#allocation2 + $0x50] sm:$0xff]  ;;  %v3186_v31 = vcombine.low %v104_v21, %v108_v22 }
  0x4f   :  { %v3191_v7 = vcombine.high %v110_v3, %v114_v6  ;;  %244 = vmatprep.subr.bf16.mxu1 %v3183_v4  ;;  %v3190_v10 = vcombine.low %v110_v3, %v114_v6  ;;  %v100_v11 = vld [vmem:[%s4542_s0] sm:$0xff]  ;;  %v3193_v19 = vcombine.high %v111_v13, %v115_v14  ;;  %v3192_v25 = vcombine.low %v111_v13, %v115_v14  ;;  %v116_v28 = vld [vmem:[#allocation2 + $0x70] sm:$0xff]  ;;  %v105_v33 = vld [vmem:[#allocation2 + $0x18] sm:$0xff] }
  0x50   :  { %245 = vmatpush1.bf16.msra.mxu1 %v3182_v5  ;;  %v3671_v15 = vld [vmem:[#allocation4 + $0x4] ss:$16 sps:$4 sm:$0xff]   ;;  %v4410_v16 = vpack.c.bf16 %v100_v11, %v100_v11  ;;  %v3676_v18 = vld [vmem:[#allocation4] ss:$16 sps:$4 sm:$0xff]   ;;  %v3195_v32 = vcombine.high %v112_v27, %v116_v28  ;;  %v109_v34 = vld [vmem:[#allocation2 + $0x38] sm:$0xff]  ;;  %v3194_v37 = vcombine.low %v112_v27, %v116_v28 }
  0x51   :  { %246 = vmatprep.subr.bf16.mxu1 %v3191_v7  ;;  %1982 = vmatprep.subr.bf16.mxu0 %v3671_v15  ;;  %v3677_v20 = vld [vmem:[#allocation4 + $0x24] ss:$16 sps:$4 sm:$0xff]   ;;  %v3682_v23 = vld [vmem:[#allocation4 + $0x20] ss:$16 sps:$4 sm:$0xff]   ;;  %v3189_v38 = vcombine.high %v105_v33, %v109_v34  ;;  %v113_v39 = vld [vmem:[#allocation2 + $0x58] sm:$0xff]  ;;  %v3188_v43 = vcombine.low %v105_v33, %v109_v34 }
  0x52   :  { %1983 = vmatpush1.bf16.msra.mxu0 %v3676_v18  ;;  %v3683_v24 = vld [vmem:[#allocation4 + $0x44] ss:$16 sps:$4 sm:$0xff]   ;;  %v3688_v29 = vld [vmem:[#allocation4 + $0x40] ss:$16 sps:$4 sm:$0xff]   ;;  %v117_v40 = vld [vmem:[#allocation2 + $0x78] sm:$0xff] }
  0x53   :  { %1984 = vmatprep.subr.bf16.mxu0 %v3677_v20  ;;  %v3689_v30 = vld [vmem:[#allocation4 + $0x64] ss:$16 sps:$4 sm:$0xff]   ;;  %v3694_v35 = vld [vmem:[#allocation4 + $0x60] ss:$16 sps:$4 sm:$0xff]   ;;  %v3197_v44 = vcombine.high %v113_v39, %v117_v40  ;;  %v3196_v47 = vcombine.low %v113_v39, %v117_v40  ;;  %v3675_v48 = vld [vmem:[#allocation4 + $0xc] ss:$16 sps:$4 sm:$0xff]  }
  0x54   :  { %247 = vmatpush1.bf16.msra.mxu1 %v3190_v10  ;;  %v3695_v36 = vld [vmem:[#allocation4 + $0x84] ss:$16 sps:$4 sm:$0xff]   ;;  %v3700_v41 = vld [vmem:[#allocation4 + $0x80] ss:$16 sps:$4 sm:$0xff]   ;;  %v3673_v51 = vld [vmem:[#allocation4 + $0x8] ss:$16 sps:$4 sm:$0xff]  }
  0x55   :  { %285 = vmatprep.subr.bf16.mxu1 %v3185_v12  ;;  %v3701_v42 = vld [vmem:[#allocation4 + $0xa4] ss:$16 sps:$4 sm:$0xff]   ;;  %v3706_v45 = vld [vmem:[#allocation4 + $0xa0] ss:$16 sps:$4 sm:$0xff]   ;;  %v3681_v52 = vld [vmem:[#allocation4 + $0x2c] ss:$16 sps:$4 sm:$0xff]  }
  0x56   :  { %1985 = vmatpush1.bf16.msra.mxu0 %v3682_v23  ;;  %v3707_v46 = vld [vmem:[#allocation4 + $0xc4] ss:$16 sps:$4 sm:$0xff]   ;;  %v3712_v49 = vld [vmem:[#allocation4 + $0xc0] ss:$16 sps:$4 sm:$0xff]   ;;  %v3679_v55 = vld [vmem:[#allocation4 + $0x28] ss:$16 sps:$4 sm:$0xff]  }
  0x57   :  { %3198 = vmatmul.mubr.msk.bf16.vlgmr.msra.gmra.mrb[0].mxu1 %vm240_vm0, %v4410_v16  ;;  %1986 = vmatprep.subr.bf16.mxu0 %v3683_v24  ;;  %v3713_v50 = vld [vmem:[#allocation4 + $0xe4] ss:$16 sps:$4 sm:$0xff]   ;;  %v3718_v53 = vld [vmem:[#allocation4 + $0xe0] ss:$16 sps:$4 sm:$0xff]   ;;  %v3687_v56 = vld [vmem:[#allocation4 + $0x4c] ss:$16 sps:$4 sm:$0xff]  }
  0x58   :  { %286 = vmatpush1.bf16.msra.mxu1 %v3184_v17  ;;  %317 = vmatprep.mubr.bf16.mxu1 %v4285_v0  ;;  %v3719_v54 = vld [vmem:[#allocation4 + $0x104] ss:$16 sps:$4 sm:$0xff]   ;;  %v3724_v57 = vld [vmem:[#allocation4 + $0x100] ss:$16 sps:$4 sm:$0xff]   ;;  %v3685_v59 = vld [vmem:[#allocation4 + $0x48] ss:$16 sps:$4 sm:$0xff]  }
  0x59   :  { %287 = vmatprep.subr.bf16.mxu1 %v3193_v19  ;;  %v3725_v58 = vld [vmem:[#allocation4 + $0x124] ss:$16 sps:$4 sm:$0xff]   ;;  %v3693_v60 = vld [vmem:[#allocation4 + $0x6c] ss:$16 sps:$4 sm:$0xff]   ;;  %v3691_v61 = vld [vmem:[#allocation4 + $0x68] ss:$16 sps:$4 sm:$0xff]  }
  0x5a   :  { %1987 = vmatpush1.bf16.msra.mxu0 %v3688_v29  ;;  %v3730_v62 = vld [vmem:[#allocation4 + $0x120] ss:$16 sps:$4 sm:$0xff]   ;;  %v3699_v63 = vld [vmem:[#allocation4 + $0x8c] ss:$16 sps:$4 sm:$0xff]   ;;  %v3737_v2 = vld [vmem:[#allocation4 + $0x164] ss:$16 sps:$4 sm:$0xff]  }
  0x5b   :  { %1988 = vmatprep.subr.bf16.mxu0 %v3689_v30  ;;  %v3736_v1 = vld [vmem:[#allocation4 + $0x140] ss:$16 sps:$4 sm:$0xff]   ;;  %v3697_v3 = vld [vmem:[#allocation4 + $0x88] ss:$16 sps:$4 sm:$0xff]   ;;  %v3705_v4 = vld [vmem:[#allocation4 + $0xac] ss:$16 sps:$4 sm:$0xff]  }
  0x5c   :  { %288 = vmatpush1.bf16.msra.mxu1 %v3192_v25  ;;  %v3742_v5 = vld [vmem:[#allocation4 + $0x160] ss:$16 sps:$4 sm:$0xff]   ;;  %v3743_v6 = vld [vmem:[#allocation4 + $0x184] ss:$16 sps:$4 sm:$0xff]   ;;  %v3703_v7 = vld [vmem:[#allocation4 + $0xa8] ss:$16 sps:$4 sm:$0xff]  }
  0x5d   :  { %326 = vmatprep.subr.bf16.mxu1 %v3187_v26  ;;  %v3711_v8 = vld [vmem:[#allocation4 + $0xcc] ss:$16 sps:$4 sm:$0xff]   ;;  %v3748_v9 = vld [vmem:[#allocation4 + $0x180] ss:$16 sps:$4 sm:$0xff]   ;;  %v3749_v10 = vld [vmem:[#allocation4 + $0x1a4] ss:$16 sps:$4 sm:$0xff]  }
  0x5e   :  { %1989 = vmatpush1.bf16.msra.mxu0 %v3694_v35  ;;  %v3709_v11 = vld [vmem:[#allocation4 + $0xc8] ss:$16 sps:$4 sm:$0xff]   ;;  %v3717_v12 = vld [vmem:[#allocation4 + $0xec] ss:$16 sps:$4 sm:$0xff]   ;;  %v3754_v13 = vld [vmem:[#allocation4 + $0x1a0] ss:$16 sps:$4 sm:$0xff]  }
  0x5f   :  { %3199 = vmatmul.mubr.msk.bf16.vlgmr.msra.gmra.mrb[4].mxu1 %vm240_vm0, %v4410_v16  ;;  %1990 = vmatprep.subr.bf16.mxu0 %v3695_v36  ;;  %v3715_v14 = vld [vmem:[#allocation4 + $0xe8] ss:$16 sps:$4 sm:$0xff]   ;;  %v3723_v15 = vld [vmem:[#allocation4 + $0x10c] ss:$16 sps:$4 sm:$0xff]   ;;  %v3755_v27 = vld [vmem:[#allocation4 + $0x1c4] ss:$16 sps:$4 sm:$0xff]  }
  0x60   :  { %327 = vmatpush1.bf16.msra.mxu1 %v3186_v31  ;;  %358 = vmatprep.mubr.bf16.mxu1 %v4285_v0  ;;  %v3729_v17 = vld [vmem:[#allocation4 + $0x12c] ss:$16 sps:$4 sm:$0xff]   ;;  %v3727_v18 = vld [vmem:[#allocation4 + $0x128] ss:$16 sps:$4 sm:$0xff]   ;;  %v3760_v30 = vld [vmem:[#allocation4 + $0x1c0] ss:$16 sps:$4 sm:$0xff]  }
  0x61   :  { %328 = vmatprep.subr.bf16.mxu1 %v3195_v32  ;;  %v3735_v19 = vld [vmem:[#allocation4 + $0x14c] ss:$16 sps:$4 sm:$0xff]   ;;  %v3733_v20 = vld [vmem:[#allocation4 + $0x148] ss:$16 sps:$4 sm:$0xff]   ;;  %v3761_v31 = vld [vmem:[#allocation4 + $0x1e4] ss:$16 sps:$4 sm:$0xff]  }
  0x62   :  { %1991 = vmatpush1.bf16.msra.mxu0 %v3700_v41  ;;  %v3741_v21 = vld [vmem:[#allocation4 + $0x16c] ss:$16 sps:$4 sm:$0xff]   ;;  %v3739_v22 = vld [vmem:[#allocation4 + $0x168] ss:$16 sps:$4 sm:$0xff]   ;;  %v3766_v34 = vld [vmem:[#allocation4 + $0x1e0] ss:$16 sps:$4 sm:$0xff]  }
  0x63   :  { %1992 = vmatprep.subr.bf16.mxu0 %v3701_v42  ;;  %v3747_v23 = vld [vmem:[#allocation4 + $0x18c] ss:$16 sps:$4 sm:$0xff]   ;;  %v3745_v24 = vld [vmem:[#allocation4 + $0x188] ss:$16 sps:$4 sm:$0xff]   ;;  %v3769_v35 = vld [vmem:[#allocation4 + $0x204] ss:$16 sps:$4 sm:$0xff]  }
  0x64   :  { %329 = vmatpush1.bf16.msra.mxu1 %v3194_v37  ;;  %v3753_v25 = vld [vmem:[#allocation4 + $0x1ac] ss:$16 sps:$4 sm:$0xff]   ;;  %v3751_v26 = vld [vmem:[#allocation4 + $0x1a8] ss:$16 sps:$4 sm:$0xff]   ;;  %v120_v37 = vlaneseq  ;;  %v4431_v40 = vld [vmem:[%s4544_s2] sm:$0xff] }
  0x65   :  { %367 = vmatprep.subr.bf16.mxu1 %v3189_v38  ;;  %v3759_v28 = vld [vmem:[#allocation4 + $0x1cc] ss:$16 sps:$4 sm:$0xff]   ;;  %v3757_v29 = vld [vmem:[#allocation4 + $0x1c8] ss:$16 sps:$4 sm:$0xff]  }
  0x66   :  { %1993 = vmatpush1.bf16.msra.mxu0 %v3706_v45  ;;  %v3765_v32 = vld [vmem:[#allocation4 + $0x1ec] ss:$16 sps:$4 sm:$0xff]   ;;  %v3763_v33 = vld [vmem:[#allocation4 + $0x1e8] ss:$16 sps:$4 sm:$0xff]   ;;  %v4423_v38 = vshrl.u32 %v120_v37, 7 }
  0x67   :  { %3200 = vmatmul.mubr.msk.bf16.vlgmr.msra.gmra.mrb[8].mxu1 %vm240_vm0, %v4410_v16  ;;  %1994 = vmatprep.subr.bf16.mxu0 %v3707_v46  ;;  %v3772_v36 = vld [vmem:[#allocation4 + $0x20c] ss:$16 sps:$4 sm:$0xff]   ;;  %v3823_v37 = vld [vmem:[#allocation4 + $0x324] ss:$16 sps:$4 sm:$0xff]  }
  0x68   :  { %368 = vmatpush1.bf16.msra.mxu1 %v3188_v43  ;;  %399 = vmatprep.mubr.bf16.mxu1 %v4285_v0  ;;  %v3731_v0 = vld [vmem:[#allocation4 + $0x144] ss:$16 sps:$4 sm:$0xff]   ;;  %v4426_v39 = vsub.s32 0, %v4423_v38  ;;  %v4434_v41 = vsub.s32 1, %v4423_v38 }
  0x69   :  { %369 = vmatprep.subr.bf16.mxu1 %v3197_v44 }
  0x6a   :  { %1995 = vmatpush1.bf16.msra.mxu0 %v3712_v49  ;;  %v123_v42 = vrot.slane %v4431_v40, %v4426_v39  ;;  %v127_v43 = vrot.slane %v4431_v40, %v4434_v41  ;;  %v134_v49 = vsub.s32 3, %v4423_v38 }
  0x6b   :  { %1996 = vmatprep.subr.bf16.mxu0 %v3713_v50 }
  0x6c   :  { %370 = vmatpush1.bf16.msra.mxu1 %v3196_v47 }
  0x6d   :  { %2146 = vmatprep.subr.bf16.mxu1 %v3675_v48 }
  0x6e   :  { %1997 = vmatpush1.bf16.msra.mxu0 %v3718_v53 }
  0x6f   :  { %3201 = vmatmul.mubr.msk.bf16.vlgmr.msra.gmra.mrb[12].mxu1 %vm240_vm0, %v4410_v16  ;;  %1998 = vmatprep.subr.bf16.mxu0 %v3719_v54  ;;  %v3721_v16 = vld [vmem:[#allocation4 + $0x108] ss:$16 sps:$4 sm:$0xff]   ;;  %v3767_v54 = vld [vmem:[#allocation4 + $0x200] ss:$16 sps:$4 sm:$0xff]  }
  0x70   :  { %2147 = vmatpush1.bf16.msra.mxu1 %v3673_v51 }
  0x71   :  { %2148 = vmatprep.subr.bf16.mxu1 %v3681_v52 }
  0x72   :  { %1999 = vmatpush1.bf16.msra.mxu0 %v3724_v57 }
  0x73   :  { %2000 = vmatprep.subr.bf16.mxu0 %v3725_v58  ;;  %v3775_v58 = vld [vmem:[#allocation4 + $0x224] ss:$16 sps:$4 sm:$0xff]  }
  0x74   :  { %2149 = vmatpush1.bf16.msra.mxu1 %v3679_v55  ;;  %v3770_v55 = vld [vmem:[#allocation4 + $0x208] ss:$16 sps:$4 sm:$0xff]  }
  0x75   :  { %2150 = vmatprep.subr.bf16.mxu1 %v3687_v56  ;;  %v135_v56 = vrot.slane %v4431_v40, %v134_v49 }
  0x76   :  { %2001 = vmatpush1.bf16.msra.mxu0 %v3730_v62  ;;  %v3773_v62 = vld [vmem:[#allocation4 + $0x220] ss:$16 sps:$4 sm:$0xff]  }
  0x77   :  { %2002 = vmatprep.subr.bf16.mxu0 %v3731_v0 }
  0x78   :  { %2151 = vmatpush1.bf16.msra.mxu1 %v3685_v59  ;;  %v3778_v59 = vld [vmem:[#allocation4 + $0x22c] ss:$16 sps:$4 sm:$0xff]  }
  0x79   :  { %2152 = vmatprep.subr.bf16.mxu1 %v3693_v60 }
  0x7a   :  { %2003 = vmatpush1.bf16.msra.mxu0 %v3736_v1 }
  0x7b   :  { %2004 = vmatprep.subr.bf16.mxu0 %v3737_v2  ;;  %v3781_v2 = vld [vmem:[#allocation4 + $0x244] ss:$16 sps:$4 sm:$0xff]  }
  0x7c   :  { %2153 = vmatpush1.bf16.msra.mxu1 %v3691_v61 }
  0x7d   :  { %2154 = vmatprep.subr.bf16.mxu1 %v3699_v63  ;;  %v3776_v63 = vld [vmem:[#allocation4 + $0x228] ss:$16 sps:$4 sm:$0xff]  }
  0x7e   :  { %2005 = vmatpush1.bf16.msra.mxu0 %v3742_v5 }
  0x7f   :  { %2006 = vmatprep.subr.bf16.mxu0 %v3743_v6  ;;  %v3779_v6 = vld [vmem:[#allocation4 + $0x240] ss:$16 sps:$4 sm:$0xff]  }
  0x80   :  { %2155 = vmatpush1.bf16.msra.mxu1 %v3697_v3  ;;  %v3784_v3 = vld [vmem:[#allocation4 + $0x24c] ss:$16 sps:$4 sm:$0xff]  }
  0x81   :  { %2156 = vmatprep.subr.bf16.mxu1 %v3705_v4 }
  0x82   :  { %2007 = vmatpush1.bf16.msra.mxu0 %v3748_v9  ;;  %v3787_v9 = vld [vmem:[#allocation4 + $0x264] ss:$16 sps:$4 sm:$0xff]  }
  0x83   :  { %2008 = vmatprep.subr.bf16.mxu0 %v3749_v10  ;;  %v3790_v10 = vld [vmem:[#allocation4 + $0x26c] ss:$16 sps:$4 sm:$0xff]  }
  0x84   :  { %2157 = vmatpush1.bf16.msra.mxu1 %v3703_v7  ;;  %v3782_v7 = vld [vmem:[#allocation4 + $0x248] ss:$16 sps:$4 sm:$0xff]  }
  0x85   :  { %2158 = vmatprep.subr.bf16.mxu1 %v3711_v8 }
  0x86   :  { %2009 = vmatpush1.bf16.msra.mxu0 %v3754_v13  ;;  %v3785_v13 = vld [vmem:[#allocation4 + $0x260] ss:$16 sps:$4 sm:$0xff]  }
  0x87   :  { %2010 = vmatprep.subr.bf16.mxu0 %v3755_v27  ;;  %v3803_v27 = vld [vmem:[#allocation4 + $0x2c0] ss:$16 sps:$4 sm:$0xff]  }
  0x88   :  { %2159 = vmatpush1.bf16.msra.mxu1 %v3709_v11 }
  0x89   :  { %2160 = vmatprep.subr.bf16.mxu1 %v3717_v12 }
  0x8a   :  { %2011 = vmatpush1.bf16.msra.mxu0 %v3760_v30  ;;  %v3814_v30 = vld [vmem:[#allocation4 + $0x2ec] ss:$16 sps:$4 sm:$0xff]  }
  0x8b   :  { %2012 = vmatprep.subr.bf16.mxu0 %v3761_v31  ;;  %v3809_v31 = vld [vmem:[#allocation4 + $0x2e0] ss:$16 sps:$4 sm:$0xff]  }
  0x8c   :  { %2161 = vmatpush1.bf16.msra.mxu1 %v3715_v14  ;;  %v3788_v14 = vld [vmem:[#allocation4 + $0x268] ss:$16 sps:$4 sm:$0xff]  }
  0x8d   :  { %2162 = vmatprep.subr.bf16.mxu1 %v3723_v15 }
  0x8e   :  { %2013 = vmatpush1.bf16.msra.mxu0 %v3766_v34  ;;  %v3820_v34 = vld [vmem:[#allocation4 + $0x30c] ss:$16 sps:$4 sm:$0xff]  }
  0x8f   :  { %2023 = vmatprep.subr.bf16.mxu0 %v3769_v35  ;;  %v3815_v35 = vld [vmem:[#allocation4 + $0x300] ss:$16 sps:$4 sm:$0xff]  }
  0x90   :  { %2163 = vmatpush1.bf16.msra.mxu1 %v3721_v16  ;;  %v3793_v16 = vld [vmem:[#allocation4 + $0x284] ss:$16 sps:$4 sm:$0xff]  }
  0x91   :  { %2164 = vmatprep.subr.bf16.mxu1 %v3729_v17  ;;  %v3796_v17 = vld [vmem:[#allocation4 + $0x28c] ss:$16 sps:$4 sm:$0xff]  }
  0x94   :  { %2165 = vmatpush1.bf16.msra.mxu1 %v3727_v18 }
  0x95   :  { %2166 = vmatprep.subr.bf16.mxu1 %v3735_v19  ;;  %v3791_v19 = vld [vmem:[#allocation4 + $0x280] ss:$16 sps:$4 sm:$0xff]  }
  0x98   :  { %2167 = vmatpush1.bf16.msra.mxu1 %v3733_v20  ;;  %v3794_v20 = vld [vmem:[#allocation4 + $0x288] ss:$16 sps:$4 sm:$0xff]  }
  0x99   :  { %2168 = vmatprep.subr.bf16.mxu1 %v3741_v21  ;;  %v3799_v21 = vld [vmem:[#allocation4 + $0x2a4] ss:$16 sps:$4 sm:$0xff]  }
  0x9c   :  { %2169 = vmatpush1.bf16.msra.mxu1 %v3739_v22  ;;  %v3802_v22 = vld [vmem:[#allocation4 + $0x2ac] ss:$16 sps:$4 sm:$0xff]  }
  0x9d   :  { %2170 = vmatprep.subr.bf16.mxu1 %v3747_v23  ;;  %v3797_v23 = vld [vmem:[#allocation4 + $0x2a0] ss:$16 sps:$4 sm:$0xff]  }
  0xa0   :  { %2171 = vmatpush1.bf16.msra.mxu1 %v3745_v24  ;;  %v3800_v24 = vld [vmem:[#allocation4 + $0x2a8] ss:$16 sps:$4 sm:$0xff]  }
  0xa1   :  { %2172 = vmatprep.subr.bf16.mxu1 %v3753_v25  ;;  %v3805_v25 = vld [vmem:[#allocation4 + $0x2c4] ss:$16 sps:$4 sm:$0xff]  }
  0xa4   :  { %2173 = vmatpush1.bf16.msra.mxu1 %v3751_v26  ;;  %v3808_v26 = vld [vmem:[#allocation4 + $0x2cc] ss:$16 sps:$4 sm:$0xff]  }
  0xa5   :  { %2174 = vmatprep.subr.bf16.mxu1 %v3759_v28  ;;  %v3806_v28 = vld [vmem:[#allocation4 + $0x2c8] ss:$16 sps:$4 sm:$0xff]  }
  0xa8   :  { %2175 = vmatpush1.bf16.msra.mxu1 %v3757_v29  ;;  %v3811_v29 = vld [vmem:[#allocation4 + $0x2e4] ss:$16 sps:$4 sm:$0xff]  }
  0xa9   :  { %2176 = vmatprep.subr.bf16.mxu1 %v3765_v32  ;;  %v3812_v32 = vld [vmem:[#allocation4 + $0x2e8] ss:$16 sps:$4 sm:$0xff]  }
  0xac   :  { %2177 = vmatpush1.bf16.msra.mxu1 %v3763_v33  ;;  %v3817_v33 = vld [vmem:[#allocation4 + $0x304] ss:$16 sps:$4 sm:$0xff]  }
  0xad   :  { %2187 = vmatprep.subr.bf16.mxu1 %v3772_v36  ;;  %v3818_v36 = vld [vmem:[#allocation4 + $0x308] ss:$16 sps:$4 sm:$0xff]  }
 0x12a   :  { %v278_v44 = vpop.f32.mrb[0].mxu1 }
 0x12b   :  { %v279_v45 = vadd.f32 %v278_v44, %v123_v42  ;;  %v280_v46 = vpop.f32.mrb[1].mxu1  ;;  %v3826_v42 = vld [vmem:[#allocation4 + $0x32c] ss:$16 sps:$4 sm:$0xff]   ;;  %v3824_v44 = vld [vmem:[#allocation4 + $0x328] ss:$16 sps:$4 sm:$0xff]  }
 0x12c   :  { %v281_v47 = vadd.f32 %v280_v46, %v127_v43  ;;  %v282_v48 = vpop.f32.mrb[2].mxu1  ;;  %v3821_v43 = vld [vmem:[#allocation4 + $0x320] ss:$16 sps:$4 sm:$0xff]   ;;  %v3832_v46 = vld [vmem:[#allocation4 + $0x34c] ss:$16 sps:$4 sm:$0xff]  }
 0x12d   :  { %v408_v50 = vmax.f32 %v279_v45, 0.0  ;;  %v283_v51 = vpop.f32.mrb[3].mxu1  ;;  %v3829_v45 = vld [vmem:[#allocation4 + $0x344] ss:$16 sps:$4 sm:$0xff]   ;;  %v3830_v48 = vld [vmem:[#allocation4 + $0x348] ss:$16 sps:$4 sm:$0xff]  }
 0x12e   :  { %v409_v52 = vmax.f32 %v281_v47, 0.0  ;;  %v3827_v47 = vld [vmem:[#allocation4 + $0x340] ss:$16 sps:$4 sm:$0xff]   ;;  %v3838_v51 = vld [vmem:[#allocation4 + $0x36c] ss:$16 sps:$4 sm:$0xff]  }
 0x12f   :  { %v416_v57 = vpack.c.bf16 %v408_v50, %v408_v50  ;;  %v3835_v50 = vld [vmem:[#allocation4 + $0x364] ss:$16 sps:$4 sm:$0xff]  }
 0x130   :  { %v417_v53 = vpack.c.bf16 %v409_v52, %v409_v52  ;;  %v3833_v52 = vld [vmem:[#allocation4 + $0x360] ss:$16 sps:$4 sm:$0xff]  }
 0x132   :  { %2014 = vmatprep.mubr.bf16.mxu0 %v417_v53  ;;  %2178 = vmatprep.mubr.bf16.mxu1 %v417_v53  ;;  %v4444_v60 = vpop.f32.mrb[4].mxu1  ;;  %v3836_v53 = vld [vmem:[#allocation4 + $0x368] ss:$16 sps:$4 sm:$0xff]  }
 0x133   :  { %2015 = vmatmul.mubr.bf16.vlgmr.msra.gmra.mrb[0].mxu0 %v416_v57  ;;  %2179 = vmatmul.mubr.bf16.vlgmr.msra.gmra.mrb[16].mxu1 %v416_v57  ;;  %v321_v61 = vpop.f32.mrb[5].mxu1  ;;  %v3839_v57 = vld [vmem:[#allocation4 + $0x380] ss:$16 sps:$4 sm:$0xff]  }
 0x134   :  { %2024 = vmatpush1.bf16.msra.mxu0 %v3767_v54  ;;  %2188 = vmatpush1.bf16.msra.mxu1 %v3770_v55  ;;  %v322_v0 = vadd.f32 %v321_v61, %v135_v56  ;;  %v323_v1 = vpop.f32.mrb[6].mxu1  ;;  %v3841_v54 = vld [vmem:[#allocation4 + $0x384] ss:$16 sps:$4 sm:$0xff]   ;;  %v3844_v55 = vld [vmem:[#allocation4 + $0x38c] ss:$16 sps:$4 sm:$0xff]   ;;  %v130_v56 = vsub.s32 2, %v4423_v38 }
 0x135   :  { %2025 = vmatprep.subr.bf16.mxu0 %v3775_v58  ;;  %2189 = vmatprep.subr.bf16.mxu1 %v3778_v59  ;;  %v324_v4 = vpop.f32.mrb[7].mxu1  ;;  %v3842_v58 = vld [vmem:[#allocation4 + $0x388] ss:$16 sps:$4 sm:$0xff]   ;;  %v3847_v59 = vld [vmem:[#allocation4 + $0x3a4] ss:$16 sps:$4 sm:$0xff]  }
 0x136   :  { %v411_v5 = vmax.f32 %v322_v0, 0.0  ;;  %v3850_v61 = vld [vmem:[#allocation4 + $0x3ac] ss:$16 sps:$4 sm:$0xff]   ;;  %v3845_v0 = vld [vmem:[#allocation4 + $0x3a0] ss:$16 sps:$4 sm:$0xff]  }
 0x137   :  { %v3848_v1 = vld [vmem:[#allocation4 + $0x3a8] ss:$16 sps:$4 sm:$0xff]   ;;  %v3856_v4 = vld [vmem:[#allocation4 + $0x3cc] ss:$16 sps:$4 sm:$0xff]  }
 0x138   :  { %2026 = vmatpush1.bf16.msra.mxu0 %v3773_v62  ;;  %2190 = vmatpush1.bf16.msra.mxu1 %v3776_v63  ;;  %v419_v8 = vpack.c.bf16 %v411_v5, %v411_v5  ;;  %v142_v62 = vsub.s32 5, %v4423_v38  ;;  %v131_v63 = vrot.slane %v4431_v40, %v130_v56 }
 0x139   :  { %2027 = vmatprep.subr.bf16.mxu0 %v3781_v2  ;;  %2191 = vmatprep.subr.bf16.mxu1 %v3784_v3  ;;  %v3853_v3 = vld [vmem:[#allocation4 + $0x3c4] ss:$16 sps:$4 sm:$0xff]  }
 0x13a   :  { %2055 = vmatprep.mubr.bf16.mxu0 %v419_v8  ;;  %2219 = vmatprep.mubr.bf16.mxu1 %v419_v8  ;;  %v4446_v11 = vpop.f32.mrb[8].mxu1  ;;  %v320_v8 = vadd.f32 %v4444_v60, %v131_v63  ;;  %v3868_v60 = vld [vmem:[#allocation4 + $0x40c] ss:$16 sps:$4 sm:$0xff]   ;;  %v3914_v63 = vld [vmem:[#allocation4 + $0x508] ss:$16 sps:$4 sm:$0xff]  }
 0x13b   :  { %v4448_v12 = vpop.f32.mrb[9].mxu1 }
 0x13c   :  { %2028 = vmatpush1.bf16.msra.mxu0 %v3779_v6  ;;  %2192 = vmatpush1.bf16.msra.mxu1 %v3782_v7  ;;  %v364_v15 = vpop.f32.mrb[10].mxu1  ;;  %v143_v6 = vrot.slane %v4431_v40, %v142_v62  ;;  %v3911_v62 = vld [vmem:[#allocation4 + $0x500] ss:$16 sps:$4 sm:$0xff]  }
 0x13d   :  { %2029 = vmatprep.subr.bf16.mxu0 %v3787_v9  ;;  %2193 = vmatprep.subr.bf16.mxu1 %v3790_v10  ;;  %v365_v18 = vpop.f32.mrb[11].mxu1  ;;  %v3851_v10 = vld [vmem:[#allocation4 + $0x3c0] ss:$16 sps:$4 sm:$0xff]   ;;  %v3862_v15 = vld [vmem:[#allocation4 + $0x3ec] ss:$16 sps:$4 sm:$0xff]  }
 0x13e   :  { %v3857_v18 = vld [vmem:[#allocation4 + $0x3e0] ss:$16 sps:$4 sm:$0xff]  }
 0x140   :  { %2030 = vmatpush1.bf16.msra.mxu0 %v3785_v13  ;;  %2194 = vmatpush1.bf16.msra.mxu1 %v3788_v14  ;;  %v3854_v13 = vld [vmem:[#allocation4 + $0x3c8] ss:$16 sps:$4 sm:$0xff]   ;;  %v3859_v14 = vld [vmem:[#allocation4 + $0x3e4] ss:$16 sps:$4 sm:$0xff]  }
 0x141   :  { %2031 = vmatprep.subr.bf16.mxu0 %v3793_v16  ;;  %2195 = vmatprep.subr.bf16.mxu1 %v3796_v17  ;;  %v363_v16 = vadd.f32 %v4448_v12, %v143_v6  ;;  %v410_v17 = vmax.f32 %v320_v8, 0.0  ;;  %v3925_v6 = vld [vmem:[#allocation4 + $0x544] ss:$16 sps:$4 sm:$0xff]   ;;  %v3923_v8 = vld [vmem:[#allocation4 + $0x540] ss:$16 sps:$4 sm:$0xff]  }
 0x142   :  { %v4455_v2 = vpop.f32.mrb[12].mxu1 }
 0x143   :  { %v4457_v5 = vpop.f32.mrb[13].mxu1 }
 0x144   :  { %2032 = vmatpush1.bf16.msra.mxu0 %v3791_v19  ;;  %2196 = vmatpush1.bf16.msra.mxu1 %v3794_v20  ;;  %v405_v7 = vpop.f32.mrb[14].mxu1  ;;  %v3860_v19 = vld [vmem:[#allocation4 + $0x3e8] ss:$16 sps:$4 sm:$0xff]   ;;  %v3865_v20 = vld [vmem:[#allocation4 + $0x404] ss:$16 sps:$4 sm:$0xff]  }
 0x145   :  { %2033 = vmatprep.subr.bf16.mxu0 %v3799_v21  ;;  %2197 = vmatprep.subr.bf16.mxu1 %v3802_v22  ;;  %v406_v9 = vpop.f32.mrb[15].mxu1  ;;  %v413_v21 = vmax.f32 %v363_v16, 0.0  ;;  %v418_v22 = vpack.c.bf16 %v410_v17, %v410_v17  ;;  %v3928_v7 = vld [vmem:[#allocation4 + $0x54c] ss:$16 sps:$4 sm:$0xff]   ;;  %v3937_v16 = vld [vmem:[#allocation4 + $0x584] ss:$16 sps:$4 sm:$0xff]  }
 0x146   :  { %v3926_v9 = vld [vmem:[#allocation4 + $0x548] ss:$16 sps:$4 sm:$0xff]   ;;  %v3940_v17 = vld [vmem:[#allocation4 + $0x58c] ss:$16 sps:$4 sm:$0xff]  }
 0x147   :  { %v421_v12 = vpack.c.bf16 %v413_v21, %v413_v21  ;;  %v3946_v21 = vld [vmem:[#allocation4 + $0x5ac] ss:$16 sps:$4 sm:$0xff]  }
 0x148   :  { %2034 = vmatpush1.bf16.msra.mxu0 %v3797_v23  ;;  %2198 = vmatpush1.bf16.msra.mxu1 %v3800_v24  ;;  %v3863_v23 = vld [vmem:[#allocation4 + $0x400] ss:$16 sps:$4 sm:$0xff]   ;;  %v3866_v24 = vld [vmem:[#allocation4 + $0x408] ss:$16 sps:$4 sm:$0xff]  }
 0x149   :  { %2035 = vmatprep.subr.bf16.mxu0 %v3805_v25  ;;  %2199 = vmatprep.subr.bf16.mxu1 %v3808_v26  ;;  %v3871_v25 = vld [vmem:[#allocation4 + $0x424] ss:$16 sps:$4 sm:$0xff]   ;;  %v3874_v26 = vld [vmem:[#allocation4 + $0x42c] ss:$16 sps:$4 sm:$0xff]  }
 0x14c   :  { %2036 = vmatpush1.bf16.msra.mxu0 %v3803_v27  ;;  %2200 = vmatpush1.bf16.msra.mxu1 %v3806_v28  ;;  %v3869_v27 = vld [vmem:[#allocation4 + $0x420] ss:$16 sps:$4 sm:$0xff]   ;;  %v3872_v28 = vld [vmem:[#allocation4 + $0x428] ss:$16 sps:$4 sm:$0xff]  }
 0x14d   :  { %2037 = vmatprep.subr.bf16.mxu0 %v3811_v29  ;;  %2201 = vmatprep.subr.bf16.mxu1 %v3814_v30  ;;  %v3877_v29 = vld [vmem:[#allocation4 + $0x444] ss:$16 sps:$4 sm:$0xff]   ;;  %v3880_v30 = vld [vmem:[#allocation4 + $0x44c] ss:$16 sps:$4 sm:$0xff]  }
 0x150   :  { %2038 = vmatpush1.bf16.msra.mxu0 %v3809_v31  ;;  %2202 = vmatpush1.bf16.msra.mxu1 %v3812_v32  ;;  %v3875_v31 = vld [vmem:[#allocation4 + $0x440] ss:$16 sps:$4 sm:$0xff]   ;;  %v3878_v32 = vld [vmem:[#allocation4 + $0x448] ss:$16 sps:$4 sm:$0xff]  }
 0x151   :  { %2039 = vmatprep.subr.bf16.mxu0 %v3817_v33  ;;  %2203 = vmatprep.subr.bf16.mxu1 %v3820_v34  ;;  %v3883_v33 = vld [vmem:[#allocation4 + $0x464] ss:$16 sps:$4 sm:$0xff]   ;;  %v3886_v34 = vld [vmem:[#allocation4 + $0x46c] ss:$16 sps:$4 sm:$0xff]  }
 0x154   :  { %2040 = vmatpush1.bf16.msra.mxu0 %v3815_v35  ;;  %2204 = vmatpush1.bf16.msra.mxu1 %v3818_v36  ;;  %v3881_v35 = vld [vmem:[#allocation4 + $0x460] ss:$16 sps:$4 sm:$0xff]   ;;  %v3884_v36 = vld [vmem:[#allocation4 + $0x468] ss:$16 sps:$4 sm:$0xff]  }
 0x155   :  { %2041 = vmatprep.subr.bf16.mxu0 %v3823_v37  ;;  %2205 = vmatprep.subr.bf16.mxu1 %v3826_v42  ;;  %v3889_v37 = vld [vmem:[#allocation4 + $0x484] ss:$16 sps:$4 sm:$0xff]   ;;  %v3892_v42 = vld [vmem:[#allocation4 + $0x48c] ss:$16 sps:$4 sm:$0xff]  }
 0x158   :  { %2042 = vmatpush1.bf16.msra.mxu0 %v3821_v43  ;;  %2206 = vmatpush1.bf16.msra.mxu1 %v3824_v44  ;;  %v3887_v43 = vld [vmem:[#allocation4 + $0x480] ss:$16 sps:$4 sm:$0xff]   ;;  %v3890_v44 = vld [vmem:[#allocation4 + $0x488] ss:$16 sps:$4 sm:$0xff]  }
 0x159   :  { %2043 = vmatprep.subr.bf16.mxu0 %v3829_v45  ;;  %2207 = vmatprep.subr.bf16.mxu1 %v3832_v46  ;;  %v3895_v45 = vld [vmem:[#allocation4 + $0x4a4] ss:$16 sps:$4 sm:$0xff]   ;;  %v3898_v46 = vld [vmem:[#allocation4 + $0x4ac] ss:$16 sps:$4 sm:$0xff]  }
 0x15c   :  { %2044 = vmatpush1.bf16.msra.mxu0 %v3827_v47  ;;  %2208 = vmatpush1.bf16.msra.mxu1 %v3830_v48  ;;  %v3893_v47 = vld [vmem:[#allocation4 + $0x4a0] ss:$16 sps:$4 sm:$0xff]   ;;  %v3896_v48 = vld [vmem:[#allocation4 + $0x4a8] ss:$16 sps:$4 sm:$0xff]  }
 0x15d   :  { %2045 = vmatprep.subr.bf16.mxu0 %v3835_v50  ;;  %2209 = vmatprep.subr.bf16.mxu1 %v3838_v51  ;;  %v3901_v50 = vld [vmem:[#allocation4 + $0x4c4] ss:$16 sps:$4 sm:$0xff]   ;;  %v3904_v51 = vld [vmem:[#allocation4 + $0x4cc] ss:$16 sps:$4 sm:$0xff]  }
 0x160   :  { %2046 = vmatpush1.bf16.msra.mxu0 %v3833_v52  ;;  %2210 = vmatpush1.bf16.msra.mxu1 %v3836_v53  ;;  %v3899_v52 = vld [vmem:[#allocation4 + $0x4c0] ss:$16 sps:$4 sm:$0xff]   ;;  %v3902_v53 = vld [vmem:[#allocation4 + $0x4c8] ss:$16 sps:$4 sm:$0xff]  }
 0x161   :  { %2047 = vmatprep.subr.bf16.mxu0 %v3841_v54  ;;  %2211 = vmatprep.subr.bf16.mxu1 %v3844_v55  ;;  %v3907_v54 = vld [vmem:[#allocation4 + $0x4e4] ss:$16 sps:$4 sm:$0xff]   ;;  %v3910_v55 = vld [vmem:[#allocation4 + $0x4ec] ss:$16 sps:$4 sm:$0xff]  }
 0x164   :  { %2048 = vmatpush1.bf16.msra.mxu0 %v3839_v57  ;;  %2212 = vmatpush1.bf16.msra.mxu1 %v3842_v58  ;;  %v3905_v57 = vld [vmem:[#allocation4 + $0x4e0] ss:$16 sps:$4 sm:$0xff]   ;;  %v3908_v58 = vld [vmem:[#allocation4 + $0x4e8] ss:$16 sps:$4 sm:$0xff]  }
 0x165   :  { %2049 = vmatprep.subr.bf16.mxu0 %v3847_v59  ;;  %2213 = vmatprep.subr.bf16.mxu1 %v3850_v61  ;;  %v3913_v59 = vld [vmem:[#allocation4 + $0x504] ss:$16 sps:$4 sm:$0xff]   ;;  %v3916_v61 = vld [vmem:[#allocation4 + $0x50c] ss:$16 sps:$4 sm:$0xff]  }
 0x168   :  { %2050 = vmatpush1.bf16.msra.mxu0 %v3845_v0  ;;  %2214 = vmatpush1.bf16.msra.mxu1 %v3848_v1  ;;  %v3919_v0 = vld [vmem:[#allocation4 + $0x524] ss:$16 sps:$4 sm:$0xff]   ;;  %v3922_v1 = vld [vmem:[#allocation4 + $0x52c] ss:$16 sps:$4 sm:$0xff]  }
 0x169   :  { %2051 = vmatprep.subr.bf16.mxu0 %v3853_v3  ;;  %2215 = vmatprep.subr.bf16.mxu1 %v3856_v4  ;;  %v3917_v3 = vld [vmem:[#allocation4 + $0x520] ss:$16 sps:$4 sm:$0xff]   ;;  %v3920_v4 = vld [vmem:[#allocation4 + $0x528] ss:$16 sps:$4 sm:$0xff]  }
 0x16c   :  { %2052 = vmatpush1.bf16.msra.mxu0 %v3851_v10  ;;  %2216 = vmatpush1.bf16.msra.mxu1 %v3854_v13  ;;  %v3931_v10 = vld [vmem:[#allocation4 + $0x564] ss:$16 sps:$4 sm:$0xff]   ;;  %v3934_v13 = vld [vmem:[#allocation4 + $0x56c] ss:$16 sps:$4 sm:$0xff]  }
 0x16d   :  { %2053 = vmatprep.subr.bf16.mxu0 %v3859_v14  ;;  %2217 = vmatprep.subr.bf16.mxu1 %v3862_v15  ;;  %v3929_v14 = vld [vmem:[#allocation4 + $0x560] ss:$16 sps:$4 sm:$0xff]   ;;  %v3932_v15 = vld [vmem:[#allocation4 + $0x568] ss:$16 sps:$4 sm:$0xff]  }
 0x170   :  { %2054 = vmatpush1.bf16.msra.mxu0 %v3857_v18  ;;  %2218 = vmatpush1.bf16.msra.mxu1 %v3860_v19  ;;  %v138_v18 = vsub.s32 4, %v4423_v38  ;;  %v3935_v19 = vld [vmem:[#allocation4 + $0x580] ss:$16 sps:$4 sm:$0xff]  }
 0x171   :  { %2064 = vmatprep.subr.bf16.mxu0 %v3865_v20  ;;  %2228 = vmatprep.subr.bf16.mxu1 %v3868_v60  ;;  %v3938_v20 = vld [vmem:[#allocation4 + $0x588] ss:$16 sps:$4 sm:$0xff]   ;;  %v3943_v60 = vld [vmem:[#allocation4 + $0x5a4] ss:$16 sps:$4 sm:$0xff]  }
 0x173   :  { %2056 = vmatmul.mubr.bf16.vlgmr.msra.gmra.mrb[0].mxu0 %v418_v22  ;;  %2220 = vmatmul.mubr.bf16.vlgmr.msra.gmra.mrb[16].mxu1 %v418_v22  ;;  %v150_v22 = vsub.s32 7, %v4423_v38 }
 0x174   :  { %2065 = vmatpush1.bf16.msra.mxu0 %v3863_v23  ;;  %2229 = vmatpush1.bf16.msra.mxu1 %v3866_v24  ;;  %v139_v23 = vrot.slane %v4431_v40, %v138_v18  ;;  %v3941_v24 = vld [vmem:[#allocation4 + $0x5a0] ss:$16 sps:$4 sm:$0xff]   ;;  %v4012_v18 = vld [vmem:[#allocation4 + $0x70c] ss:$16 sps:$4 sm:$0xff]  }
 0x175   :  { %2066 = vmatprep.subr.bf16.mxu0 %v3871_v25  ;;  %2230 = vmatprep.subr.bf16.mxu1 %v3874_v26  ;;  %v3944_v25 = vld [vmem:[#allocation4 + $0x5a8] ss:$16 sps:$4 sm:$0xff]   ;;  %v3949_v26 = vld [vmem:[#allocation4 + $0x5c4] ss:$16 sps:$4 sm:$0xff]  }
 0x176   :  { %2096 = vmatprep.mubr.bf16.mxu0 %v421_v12  ;;  %2260 = vmatprep.mubr.bf16.mxu1 %v421_v12  ;;  %v3952_v12 = vld [vmem:[#allocation4 + $0x5cc] ss:$16 sps:$4 sm:$0xff]  }
 0x178   :  { %2067 = vmatpush1.bf16.msra.mxu0 %v3869_v27  ;;  %2231 = vmatpush1.bf16.msra.mxu1 %v3872_v28  ;;  %v151_v27 = vrot.slane %v4431_v40, %v150_v22  ;;  %v361_v28 = vadd.f32 %v4446_v11, %v139_v23  ;;  %v4013_v22 = vld [vmem:[#allocation4 + $0x720] ss:$16 sps:$4 sm:$0xff]   ;;  %v4016_v23 = vld [vmem:[#allocation4 + $0x728] ss:$16 sps:$4 sm:$0xff]  }
 0x179   :  { %2068 = vmatprep.subr.bf16.mxu0 %v3877_v29  ;;  %2232 = vmatprep.subr.bf16.mxu1 %v3880_v30  ;;  %v3947_v29 = vld [vmem:[#allocation4 + $0x5c0] ss:$16 sps:$4 sm:$0xff]   ;;  %v3950_v30 = vld [vmem:[#allocation4 + $0x5c8] ss:$16 sps:$4 sm:$0xff]  }
 0x17c   :  { %2069 = vmatpush1.bf16.msra.mxu0 %v3875_v31  ;;  %2233 = vmatpush1.bf16.msra.mxu1 %v3878_v32  ;;  %v3955_v31 = vld [vmem:[#allocation4 + $0x5e4] ss:$16 sps:$4 sm:$0xff]   ;;  %v3958_v32 = vld [vmem:[#allocation4 + $0x5ec] ss:$16 sps:$4 sm:$0xff]  }
 0x17d   :  { %2070 = vmatprep.subr.bf16.mxu0 %v3883_v33  ;;  %2234 = vmatprep.subr.bf16.mxu1 %v3886_v34  ;;  %v404_v33 = vadd.f32 %v4457_v5, %v151_v27  ;;  %v412_v34 = vmax.f32 %v361_v28, 0.0  ;;  %v4027_v27 = vld [vmem:[#allocation4 + $0x764] ss:$16 sps:$4 sm:$0xff]   ;;  %v4030_v28 = vld [vmem:[#allocation4 + $0x76c] ss:$16 sps:$4 sm:$0xff]  }
 0x17f   :  { %v415_v11 = vmax.f32 %v404_v33, 0.0  ;;  %v4031_v33 = vld [vmem:[#allocation4 + $0x780] ss:$16 sps:$4 sm:$0xff]  }
 0x180   :  { %2071 = vmatpush1.bf16.msra.mxu0 %v3881_v35  ;;  %2235 = vmatpush1.bf16.msra.mxu1 %v3884_v36  ;;  %v3953_v35 = vld [vmem:[#allocation4 + $0x5e0] ss:$16 sps:$4 sm:$0xff]   ;;  %v3956_v36 = vld [vmem:[#allocation4 + $0x5e8] ss:$16 sps:$4 sm:$0xff]  }
 0x181   :  { %2072 = vmatprep.subr.bf16.mxu0 %v3889_v37  ;;  %2236 = vmatprep.subr.bf16.mxu1 %v3892_v42  ;;  %v3961_v37 = vld [vmem:[#allocation4 + $0x604] ss:$16 sps:$4 sm:$0xff]   ;;  %v3964_v42 = vld [vmem:[#allocation4 + $0x60c] ss:$16 sps:$4 sm:$0xff]   ;;  %v423_v5 = vpack.c.bf16 %v415_v11, %v415_v11  ;;  %v4040_v11 = vld [vmem:[#allocation4 + $0x7a8] ss:$16 sps:$4 sm:$0xff]  }
 0x184   :  { %2073 = vmatpush1.bf16.msra.mxu0 %v3887_v43  ;;  %2237 = vmatpush1.bf16.msra.mxu1 %v3890_v44  ;;  %v420_v43 = vpack.c.bf16 %v412_v34, %v412_v34  ;;  %v3959_v44 = vld [vmem:[#allocation4 + $0x600] ss:$16 sps:$4 sm:$0xff]   ;;  %v4034_v34 = vld [vmem:[#allocation4 + $0x788] ss:$16 sps:$4 sm:$0xff]  }
 0x185   :  { %2074 = vmatprep.subr.bf16.mxu0 %v3895_v45  ;;  %2238 = vmatprep.subr.bf16.mxu1 %v3898_v46  ;;  %v3962_v45 = vld [vmem:[#allocation4 + $0x608] ss:$16 sps:$4 sm:$0xff]   ;;  %v3967_v46 = vld [vmem:[#allocation4 + $0x624] ss:$16 sps:$4 sm:$0xff]  }
 0x188   :  { %2075 = vmatpush1.bf16.msra.mxu0 %v3893_v47  ;;  %2239 = vmatpush1.bf16.msra.mxu1 %v3896_v48  ;;  %v3970_v47 = vld [vmem:[#allocation4 + $0x62c] ss:$16 sps:$4 sm:$0xff]   ;;  %v3965_v48 = vld [vmem:[#allocation4 + $0x620] ss:$16 sps:$4 sm:$0xff]  }
 0x189   :  { %2076 = vmatprep.subr.bf16.mxu0 %v3901_v50  ;;  %2240 = vmatprep.subr.bf16.mxu1 %v3904_v51  ;;  %v3968_v50 = vld [vmem:[#allocation4 + $0x628] ss:$16 sps:$4 sm:$0xff]   ;;  %v3973_v51 = vld [vmem:[#allocation4 + $0x644] ss:$16 sps:$4 sm:$0xff]  }
 0x18c   :  { %2077 = vmatpush1.bf16.msra.mxu0 %v3899_v52  ;;  %2241 = vmatpush1.bf16.msra.mxu1 %v3902_v53  ;;  %v3976_v52 = vld [vmem:[#allocation4 + $0x64c] ss:$16 sps:$4 sm:$0xff]   ;;  %v3971_v53 = vld [vmem:[#allocation4 + $0x640] ss:$16 sps:$4 sm:$0xff]  }
 0x18d   :  { %2078 = vmatprep.subr.bf16.mxu0 %v3907_v54  ;;  %2242 = vmatprep.subr.bf16.mxu1 %v3910_v55  ;;  %v3974_v54 = vld [vmem:[#allocation4 + $0x648] ss:$16 sps:$4 sm:$0xff]   ;;  %v3979_v55 = vld [vmem:[#allocation4 + $0x664] ss:$16 sps:$4 sm:$0xff]  }
 0x190   :  { %2079 = vmatpush1.bf16.msra.mxu0 %v3905_v57  ;;  %2243 = vmatpush1.bf16.msra.mxu1 %v3908_v58  ;;  %v3982_v57 = vld [vmem:[#allocation4 + $0x66c] ss:$16 sps:$4 sm:$0xff]   ;;  %v3977_v58 = vld [vmem:[#allocation4 + $0x660] ss:$16 sps:$4 sm:$0xff]  }
 0x191   :  { %2080 = vmatprep.subr.bf16.mxu0 %v3913_v59  ;;  %2244 = vmatprep.subr.bf16.mxu1 %v3916_v61  ;;  %v3980_v59 = vld [vmem:[#allocation4 + $0x668] ss:$16 sps:$4 sm:$0xff]   ;;  %v3985_v61 = vld [vmem:[#allocation4 + $0x684] ss:$16 sps:$4 sm:$0xff]  }
 0x194   :  { %2081 = vmatpush1.bf16.msra.mxu0 %v3911_v62  ;;  %2245 = vmatpush1.bf16.msra.mxu1 %v3914_v63  ;;  %v3988_v62 = vld [vmem:[#allocation4 + $0x68c] ss:$16 sps:$4 sm:$0xff]   ;;  %v3983_v63 = vld [vmem:[#allocation4 + $0x680] ss:$16 sps:$4 sm:$0xff]  }
 0x195   :  { %2082 = vmatprep.subr.bf16.mxu0 %v3919_v0  ;;  %2246 = vmatprep.subr.bf16.mxu1 %v3922_v1  ;;  %v3986_v0 = vld [vmem:[#allocation4 + $0x688] ss:$16 sps:$4 sm:$0xff]   ;;  %v3991_v1 = vld [vmem:[#allocation4 + $0x6a4] ss:$16 sps:$4 sm:$0xff]  }
 0x198   :  { %2083 = vmatpush1.bf16.msra.mxu0 %v3917_v3  ;;  %2247 = vmatpush1.bf16.msra.mxu1 %v3920_v4  ;;  %v3994_v3 = vld [vmem:[#allocation4 + $0x6ac] ss:$16 sps:$4 sm:$0xff]   ;;  %v3989_v4 = vld [vmem:[#allocation4 + $0x6a0] ss:$16 sps:$4 sm:$0xff]  }
 0x199   :  { %2084 = vmatprep.subr.bf16.mxu0 %v3925_v6  ;;  %2248 = vmatprep.subr.bf16.mxu1 %v3928_v7  ;;  %v3992_v6 = vld [vmem:[#allocation4 + $0x6a8] ss:$16 sps:$4 sm:$0xff]   ;;  %v3997_v7 = vld [vmem:[#allocation4 + $0x6c4] ss:$16 sps:$4 sm:$0xff]  }
 0x19c   :  { %2085 = vmatpush1.bf16.msra.mxu0 %v3923_v8  ;;  %2249 = vmatpush1.bf16.msra.mxu1 %v3926_v9  ;;  %v4000_v8 = vld [vmem:[#allocation4 + $0x6cc] ss:$16 sps:$4 sm:$0xff]   ;;  %v3995_v9 = vld [vmem:[#allocation4 + $0x6c0] ss:$16 sps:$4 sm:$0xff]  }
 0x19d   :  { %2086 = vmatprep.subr.bf16.mxu0 %v3931_v10  ;;  %2250 = vmatprep.subr.bf16.mxu1 %v3934_v13  ;;  %v3998_v10 = vld [vmem:[#allocation4 + $0x6c8] ss:$16 sps:$4 sm:$0xff]   ;;  %v4003_v13 = vld [vmem:[#allocation4 + $0x6e4] ss:$16 sps:$4 sm:$0xff]  }
 0x1a0   :  { %2087 = vmatpush1.bf16.msra.mxu0 %v3929_v14  ;;  %2251 = vmatpush1.bf16.msra.mxu1 %v3932_v15  ;;  %v4006_v14 = vld [vmem:[#allocation4 + $0x6ec] ss:$16 sps:$4 sm:$0xff]   ;;  %v4001_v15 = vld [vmem:[#allocation4 + $0x6e0] ss:$16 sps:$4 sm:$0xff]  }
 0x1a1   :  { %2088 = vmatprep.subr.bf16.mxu0 %v3937_v16  ;;  %2252 = vmatprep.subr.bf16.mxu1 %v3940_v17  ;;  %v4004_v16 = vld [vmem:[#allocation4 + $0x6e8] ss:$16 sps:$4 sm:$0xff]   ;;  %v4009_v17 = vld [vmem:[#allocation4 + $0x704] ss:$16 sps:$4 sm:$0xff]  }
 0x1a4   :  { %2089 = vmatpush1.bf16.msra.mxu0 %v3935_v19  ;;  %2253 = vmatpush1.bf16.msra.mxu1 %v3938_v20  ;;  %v4007_v19 = vld [vmem:[#allocation4 + $0x700] ss:$16 sps:$4 sm:$0xff]   ;;  %v4010_v20 = vld [vmem:[#allocation4 + $0x708] ss:$16 sps:$4 sm:$0xff]  }
 0x1a5   :  { %2090 = vmatprep.subr.bf16.mxu0 %v3943_v60  ;;  %2254 = vmatprep.subr.bf16.mxu1 %v3946_v21  ;;  %v4015_v60 = vld [vmem:[#allocation4 + $0x724] ss:$16 sps:$4 sm:$0xff]   ;;  %v4018_v21 = vld [vmem:[#allocation4 + $0x72c] ss:$16 sps:$4 sm:$0xff]  }
 0x1a8   :  { %2091 = vmatpush1.bf16.msra.mxu0 %v3941_v24  ;;  %2255 = vmatpush1.bf16.msra.mxu1 %v3944_v25  ;;  %v4021_v24 = vld [vmem:[#allocation4 + $0x744] ss:$16 sps:$4 sm:$0xff]   ;;  %v4024_v25 = vld [vmem:[#allocation4 + $0x74c] ss:$16 sps:$4 sm:$0xff]  }
 0x1a9   :  { %2092 = vmatprep.subr.bf16.mxu0 %v3949_v26  ;;  %2256 = vmatprep.subr.bf16.mxu1 %v3952_v12  ;;  %v4019_v26 = vld [vmem:[#allocation4 + $0x740] ss:$16 sps:$4 sm:$0xff]   ;;  %v4022_v12 = vld [vmem:[#allocation4 + $0x748] ss:$16 sps:$4 sm:$0xff]  }
 0x1ac   :  { %2093 = vmatpush1.bf16.msra.mxu0 %v3947_v29  ;;  %2257 = vmatpush1.bf16.msra.mxu1 %v3950_v30  ;;  %v4025_v29 = vld [vmem:[#allocation4 + $0x760] ss:$16 sps:$4 sm:$0xff]   ;;  %v4028_v30 = vld [vmem:[#allocation4 + $0x768] ss:$16 sps:$4 sm:$0xff]  }
 0x1ad   :  { %2094 = vmatprep.subr.bf16.mxu0 %v3955_v31  ;;  %2258 = vmatprep.subr.bf16.mxu1 %v3958_v32  ;;  %v4033_v31 = vld [vmem:[#allocation4 + $0x784] ss:$16 sps:$4 sm:$0xff]   ;;  %v4036_v32 = vld [vmem:[#allocation4 + $0x78c] ss:$16 sps:$4 sm:$0xff]  }
 0x1b0   :  { %2095 = vmatpush1.bf16.msra.mxu0 %v3953_v35  ;;  %2259 = vmatpush1.bf16.msra.mxu1 %v3956_v36  ;;  %v146_v35 = vsub.s32 6, %v4423_v38  ;;  %v4039_v36 = vld [vmem:[#allocation4 + $0x7a4] ss:$16 sps:$4 sm:$0xff]   ;;  %v4165_v38 = vld [vmem:[#allocation7 + $0x78] sm:$0xff]  }
 0x1b1   :  { %2105 = vmatprep.subr.bf16.mxu0 %v3961_v37  ;;  %2269 = vmatprep.subr.bf16.mxu1 %v3964_v42  ;;  %v4042_v37 = vld [vmem:[#allocation4 + $0x7ac] ss:$16 sps:$4 sm:$0xff]   ;;  %v4037_v42 = vld [vmem:[#allocation4 + $0x7a0] ss:$16 sps:$4 sm:$0xff]  }
 0x1b3   :  { %2097 = vmatmul.mubr.bf16.vlgmr.msra.gmra.mrb[0].mxu0 %v420_v43  ;;  %2261 = vmatmul.mubr.bf16.vlgmr.msra.gmra.mrb[16].mxu1 %v420_v43  ;;  %v147_v43 = vrot.slane %v4431_v40, %v146_v35  ;;  %v4057_v40 = vld [vmem:[#allocation6 + $0x4] ss:$8 sps:$4 sm:$0xff]  }
 0x1b4   :  { %2106 = vmatpush1.bf16.msra.mxu0 %v3959_v44  ;;  %2270 = vmatpush1.bf16.msra.mxu1 %v3962_v45  ;;  %v4045_v44 = vld [vmem:[#allocation4 + $0x7c4] ss:$16 sps:$4 sm:$0xff]   ;;  %v4048_v45 = vld [vmem:[#allocation4 + $0x7cc] ss:$16 sps:$4 sm:$0xff]  }
 0x1b5   :  { %2107 = vmatprep.subr.bf16.mxu0 %v3967_v46  ;;  %2271 = vmatprep.subr.bf16.mxu1 %v3970_v47  ;;  %v4043_v46 = vld [vmem:[#allocation4 + $0x7c0] ss:$16 sps:$4 sm:$0xff]   ;;  %v4046_v47 = vld [vmem:[#allocation4 + $0x7c8] ss:$16 sps:$4 sm:$0xff]  }
 0x1b6   :  { %2137 = vmatprep.mubr.bf16.mxu0 %v423_v5  ;;  %2301 = vmatprep.mubr.bf16.mxu1 %v423_v5  ;;  %v402_v5 = vadd.f32 %v4455_v2, %v147_v43  ;;  %v4058_v2 = vld [vmem:[#allocation6 + $0x10] ss:$8 sps:$4 sm:$0xff]   ;;  %v4160_v35 = vld [vmem:[#allocation7 + $0x20] sm:$0xff]  }
 0x1b8   :  { %2108 = vmatpush1.bf16.msra.mxu0 %v3965_v48  ;;  %2272 = vmatpush1.bf16.msra.mxu1 %v3968_v50  ;;  %v4051_v48 = vld [vmem:[#allocation4 + $0x7e4] ss:$16 sps:$4 sm:$0xff]   ;;  %v4054_v50 = vld [vmem:[#allocation4 + $0x7ec] ss:$16 sps:$4 sm:$0xff]  }
 0x1b9   :  { %2109 = vmatprep.subr.bf16.mxu0 %v3973_v51  ;;  %2273 = vmatprep.subr.bf16.mxu1 %v3976_v52  ;;  %v4049_v51 = vld [vmem:[#allocation4 + $0x7e0] ss:$16 sps:$4 sm:$0xff]   ;;  %v4052_v52 = vld [vmem:[#allocation4 + $0x7e8] ss:$16 sps:$4 sm:$0xff]  }
 0x1bc   :  { %2110 = vmatpush1.bf16.msra.mxu0 %v3971_v53  ;;  %2274 = vmatpush1.bf16.msra.mxu1 %v3974_v54  ;;  %v414_v53 = vmax.f32 %v402_v5, 0.0  ;;  %v4055_v54 = vld [vmem:[#allocation6] ss:$8 sps:$4 sm:$0xff]  }
 0x1bd   :  { %2111 = vmatprep.subr.bf16.mxu0 %v3979_v55  ;;  %2275 = vmatprep.subr.bf16.mxu1 %v3982_v57  ;;  %v4060_v57 = vld [vmem:[#allocation6 + $0x14] ss:$8 sps:$4 sm:$0xff]  }
 0x1be   :  { %v422_v55 = vpack.c.bf16 %v414_v53, %v414_v53 }
 0x1c0   :  { %2112 = vmatpush1.bf16.msra.mxu0 %v3977_v58  ;;  %2276 = vmatpush1.bf16.msra.mxu1 %v3980_v59  ;;  %v4063_v58 = vld [vmem:[#allocation6 + $0x24] ss:$8 sps:$4 sm:$0xff]   ;;  %v4061_v59 = vld [vmem:[#allocation6 + $0x20] ss:$8 sps:$4 sm:$0xff]  }
 0x1c1   :  { %2113 = vmatprep.subr.bf16.mxu0 %v3985_v61  ;;  %2277 = vmatprep.subr.bf16.mxu1 %v3988_v62  ;;  %v4066_v61 = vld [vmem:[#allocation6 + $0x34] ss:$8 sps:$4 sm:$0xff]   ;;  %v4064_v62 = vld [vmem:[#allocation6 + $0x30] ss:$8 sps:$4 sm:$0xff]  }
 0x1c4   :  { %2114 = vmatpush1.bf16.msra.mxu0 %v3983_v63  ;;  %2278 = vmatpush1.bf16.msra.mxu1 %v3986_v0  ;;  %v4069_v63 = vld [vmem:[#allocation6 + $0x44] ss:$8 sps:$4 sm:$0xff]   ;;  %v4067_v0 = vld [vmem:[#allocation6 + $0x40] ss:$8 sps:$4 sm:$0xff]  }
 0x1c5   :  { %2115 = vmatprep.subr.bf16.mxu0 %v3991_v1  ;;  %2279 = vmatprep.subr.bf16.mxu1 %v3994_v3  ;;  %v4072_v1 = vld [vmem:[#allocation6 + $0x54] ss:$8 sps:$4 sm:$0xff]   ;;  %v4070_v3 = vld [vmem:[#allocation6 + $0x50] ss:$8 sps:$4 sm:$0xff]  }
 0x1c8   :  { %2116 = vmatpush1.bf16.msra.mxu0 %v3989_v4  ;;  %2280 = vmatpush1.bf16.msra.mxu1 %v3992_v6  ;;  %v4075_v4 = vld [vmem:[#allocation6 + $0x64] ss:$8 sps:$4 sm:$0xff]   ;;  %v4073_v6 = vld [vmem:[#allocation6 + $0x60] ss:$8 sps:$4 sm:$0xff]  }
 0x1c9   :  { %2117 = vmatprep.subr.bf16.mxu0 %v3997_v7  ;;  %2281 = vmatprep.subr.bf16.mxu1 %v4000_v8  ;;  %v4078_v7 = vld [vmem:[#allocation6 + $0x74] ss:$8 sps:$4 sm:$0xff]   ;;  %v4076_v8 = vld [vmem:[#allocation6 + $0x70] ss:$8 sps:$4 sm:$0xff]  }
 0x1cc   :  { %2118 = vmatpush1.bf16.msra.mxu0 %v3995_v9  ;;  %2282 = vmatpush1.bf16.msra.mxu1 %v3998_v10  ;;  %v4081_v9 = vld [vmem:[#allocation6 + $0x84] ss:$8 sps:$4 sm:$0xff]   ;;  %v4079_v10 = vld [vmem:[#allocation6 + $0x80] ss:$8 sps:$4 sm:$0xff]  }
 0x1cd   :  { %2119 = vmatprep.subr.bf16.mxu0 %v4003_v13  ;;  %2283 = vmatprep.subr.bf16.mxu1 %v4006_v14  ;;  %v4084_v13 = vld [vmem:[#allocation6 + $0x94] ss:$8 sps:$4 sm:$0xff]   ;;  %v4082_v14 = vld [vmem:[#allocation6 + $0x90] ss:$8 sps:$4 sm:$0xff]  }
 0x1d0   :  { %2120 = vmatpush1.bf16.msra.mxu0 %v4001_v15  ;;  %2284 = vmatpush1.bf16.msra.mxu1 %v4004_v16  ;;  %v4087_v15 = vld [vmem:[#allocation6 + $0xa4] ss:$8 sps:$4 sm:$0xff]   ;;  %v4085_v16 = vld [vmem:[#allocation6 + $0xa0] ss:$8 sps:$4 sm:$0xff]  }
 0x1d1   :  { %2121 = vmatprep.subr.bf16.mxu0 %v4009_v17  ;;  %2285 = vmatprep.subr.bf16.mxu1 %v4012_v18  ;;  %v4090_v17 = vld [vmem:[#allocation6 + $0xb4] ss:$8 sps:$4 sm:$0xff]   ;;  %v4088_v18 = vld [vmem:[#allocation6 + $0xb0] ss:$8 sps:$4 sm:$0xff]  }
 0x1d4   :  { %2122 = vmatpush1.bf16.msra.mxu0 %v4007_v19  ;;  %2286 = vmatpush1.bf16.msra.mxu1 %v4010_v20  ;;  %v4093_v19 = vld [vmem:[#allocation6 + $0xc4] ss:$8 sps:$4 sm:$0xff]   ;;  %v4091_v20 = vld [vmem:[#allocation6 + $0xc0] ss:$8 sps:$4 sm:$0xff]  }
 0x1d5   :  { %2123 = vmatprep.subr.bf16.mxu0 %v4015_v60  ;;  %2287 = vmatprep.subr.bf16.mxu1 %v4018_v21  ;;  %v4096_v60 = vld [vmem:[#allocation6 + $0xd4] ss:$8 sps:$4 sm:$0xff]   ;;  %v4094_v21 = vld [vmem:[#allocation6 + $0xd0] ss:$8 sps:$4 sm:$0xff]  }
 0x1d8   :  { %2124 = vmatpush1.bf16.msra.mxu0 %v4013_v22  ;;  %2288 = vmatpush1.bf16.msra.mxu1 %v4016_v23  ;;  %v4099_v22 = vld [vmem:[#allocation6 + $0xe4] ss:$8 sps:$4 sm:$0xff]   ;;  %v4097_v23 = vld [vmem:[#allocation6 + $0xe0] ss:$8 sps:$4 sm:$0xff]  }
 0x1d9   :  { %2125 = vmatprep.subr.bf16.mxu0 %v4021_v24  ;;  %2289 = vmatprep.subr.bf16.mxu1 %v4024_v25  ;;  %v4102_v24 = vld [vmem:[#allocation6 + $0xf4] ss:$8 sps:$4 sm:$0xff]   ;;  %v4100_v25 = vld [vmem:[#allocation6 + $0xf0] ss:$8 sps:$4 sm:$0xff]  }
 0x1dc   :  { %2126 = vmatpush1.bf16.msra.mxu0 %v4019_v26  ;;  %2290 = vmatpush1.bf16.msra.mxu1 %v4022_v12  ;;  %v4105_v26 = vld [vmem:[#allocation6 + $0x104] ss:$8 sps:$4 sm:$0xff]  }
 0x1dd   :  { %2127 = vmatprep.subr.bf16.mxu0 %v4027_v27  ;;  %2291 = vmatprep.subr.bf16.mxu1 %v4030_v28  ;;  %v4151_v12 = vld [vmem:[#allocation7 + $0x40] sm:$0xff]   ;;  %v4153_v28 = vld [vmem:[#allocation7 + $0x48] sm:$0xff]  }
 0x1de   :  { %v4152_v27 = vld [vmem:[#allocation7] sm:$0xff]  }
 0x1e0   :  { %2128 = vmatpush1.bf16.msra.mxu0 %v4025_v29  ;;  %2292 = vmatpush1.bf16.msra.mxu1 %v4028_v30  ;;  %v4154_v29 = vld [vmem:[#allocation7 + $0x8] sm:$0xff]   ;;  %v4155_v30 = vld [vmem:[#allocation7 + $0x50] sm:$0xff]  }
 0x1e1   :  { %2129 = vmatprep.subr.bf16.mxu0 %v4033_v31  ;;  %2293 = vmatprep.subr.bf16.mxu1 %v4036_v32  ;;  %v4156_v31 = vld [vmem:[#allocation7 + $0x10] sm:$0xff]   ;;  %v4157_v32 = vld [vmem:[#allocation7 + $0x58] sm:$0xff]  }
 0x1e4   :  { %2130 = vmatpush1.bf16.msra.mxu0 %v4031_v33  ;;  %2294 = vmatpush1.bf16.msra.mxu1 %v4034_v34  ;;  %v4158_v33 = vld [vmem:[#allocation7 + $0x18] sm:$0xff]   ;;  %v4159_v34 = vld [vmem:[#allocation7 + $0x60] sm:$0xff]  }
 0x1e5   :  { %2131 = vmatprep.subr.bf16.mxu0 %v4039_v36  ;;  %2295 = vmatprep.subr.bf16.mxu1 %v4042_v37  ;;  %v4161_v36 = vld [vmem:[#allocation7 + $0x68] sm:$0xff]  }
 0x1e6   :  { %v4162_v37 = vld [vmem:[#allocation7 + $0x28] sm:$0xff]  }
 0x1e8   :  { %2132 = vmatpush1.bf16.msra.mxu0 %v4037_v42  ;;  %2296 = vmatpush1.bf16.msra.mxu1 %v4040_v11  ;;  %v4474_v42 = vld [vmem:[%s4546_s4] sm:$0xf] }
 0x1e9   :  { %2133 = vmatprep.subr.bf16.mxu0 %v4045_v44  ;;  %2297 = vmatprep.subr.bf16.mxu1 %v4048_v45  ;;  %v685_v11 = vrot.slane %v4474_v42, %v4426_v39  ;;  %v689_v43 = vrot.slane %v4474_v42, %v4434_v41  ;;  %v697_v44 = vrot.slane %v4474_v42, %v134_v49 }
 0x1ec   :  { %2134 = vmatpush1.bf16.msra.mxu0 %v4043_v46  ;;  %2298 = vmatpush1.bf16.msra.mxu1 %v4046_v47 }
 0x1ed   :  { %2135 = vmatprep.subr.bf16.mxu0 %v4051_v48  ;;  %2299 = vmatprep.subr.bf16.mxu1 %v4054_v50 }
 0x1f0   :  { %2136 = vmatpush1.bf16.msra.mxu0 %v4049_v51  ;;  %2300 = vmatpush1.bf16.msra.mxu1 %v4052_v52 }
 0x1f1   :  { %2714 = vmatprep.subr.bf16.mxu0 %v4057_v40  ;;  %3554 = vmatprep.subr.bf16.mxu1 %v4151_v12  ;;  %v693_v12 = vrot.slane %v4474_v42, %v130_v56  ;;  %v4166_v56 = vld [vmem:[#allocation7 + $0x38] sm:$0xff]  }
 0x1f3   :  { %2138 = vmatmul.mubr.bf16.vlgmr.msra.gmra.mrb[0].mxu0 %v422_v55  ;;  %2302 = vmatmul.mubr.bf16.vlgmr.msra.gmra.mrb[16].mxu1 %v422_v55 }
 0x1f4   :  { %2715 = vmatpush1.bf16.msra.mxu0 %v4055_v54  ;;  %3555 = vmatpush3.bf16.msra.mxu1 %v4152_v27  ;;  %v4147_v27 = vld [vmem:[#allocation6 + $0x1e4] ss:$8 sps:$4 sm:$0xff]  }
 0x1f5   :  { %2716 = vmatprep.subr.bf16.mxu0 %v4060_v57  ;;  %3556 = vmatprep.subr.bf16.mxu1 %v4153_v28  ;;  %v4145_v28 = vld [vmem:[#allocation6 + $0x1e0] ss:$8 sps:$4 sm:$0xff]  }
 0x1f8   :  { %2717 = vmatpush1.bf16.msra.mxu0 %v4058_v2  ;;  %3557 = vmatpush3.bf16.msra.mxu1 %v4154_v29 }
 0x1f9   :  { %2718 = vmatprep.subr.bf16.mxu0 %v4063_v58  ;;  %3558 = vmatprep.subr.bf16.mxu1 %v4155_v30  ;;  %v4150_v30 = vld [vmem:[#allocation6 + $0x1f4] ss:$8 sps:$4 sm:$0xff]  }
 0x1fc   :  { %2719 = vmatpush1.bf16.msra.mxu0 %v4061_v59  ;;  %3559 = vmatpush3.bf16.msra.mxu1 %v4156_v31  ;;  %v4103_v59 = vld [vmem:[#allocation6 + $0x100] ss:$8 sps:$4 sm:$0xff]   ;;  %v4148_v31 = vld [vmem:[#allocation6 + $0x1f0] ss:$8 sps:$4 sm:$0xff]  }
 0x1fd   :  { %2720 = vmatprep.subr.bf16.mxu0 %v4066_v61  ;;  %3560 = vmatprep.subr.bf16.mxu1 %v4157_v32 }
 0x200   :  { %2721 = vmatpush1.bf16.msra.mxu0 %v4064_v62  ;;  %3561 = vmatpush3.bf16.msra.mxu1 %v4158_v33  ;;  %v4108_v62 = vld [vmem:[#allocation6 + $0x114] ss:$8 sps:$4 sm:$0xff]  }
 0x201   :  { %2722 = vmatprep.subr.bf16.mxu0 %v4069_v63  ;;  %3562 = vmatprep.subr.bf16.mxu1 %v4159_v34  ;;  %v4106_v63 = vld [vmem:[#allocation6 + $0x110] ss:$8 sps:$4 sm:$0xff]  }
 0x202   :  { %v4163_v34 = vld [vmem:[#allocation7 + $0x70] sm:$0xff]  }
 0x204   :  { %2723 = vmatpush1.bf16.msra.mxu0 %v4067_v0  ;;  %3563 = vmatpush3.bf16.msra.mxu1 %v4160_v35  ;;  %v4111_v0 = vld [vmem:[#allocation6 + $0x124] ss:$8 sps:$4 sm:$0xff]   ;;  %v4164_v35 = vld [vmem:[#allocation7 + $0x30] sm:$0xff]  }
 0x205   :  { %2724 = vmatprep.subr.bf16.mxu0 %v4072_v1  ;;  %3564 = vmatprep.subr.bf16.mxu1 %v4161_v36  ;;  %v4109_v1 = vld [vmem:[#allocation6 + $0x120] ss:$8 sps:$4 sm:$0xff]   ;;  %v4286_v36 = vmov 0.0  }
 0x208   :  { %2725 = vmatpush1.bf16.msra.mxu0 %v4070_v3  ;;  %3565 = vmatpush3.bf16.msra.mxu1 %v4162_v37  ;;  %v4114_v3 = vld [vmem:[#allocation6 + $0x134] ss:$8 sps:$4 sm:$0xff]   ;;  %v2382_v37 = vld [vmem:[%s4548_s6] sm:$0x3] }
 0x209   :  { %2726 = vmatprep.subr.bf16.mxu0 %v4075_v4  ;;  %v4112_v4 = vld [vmem:[#allocation6 + $0x130] ss:$8 sps:$4 sm:$0xff]   ;;  %3566 = vmatprep.subr.bf16.mxu1 %v4163_v34  ;;  %v2387_v42 = vrot.slane %v2382_v37, %v4426_v39  ;;  %v4168_v39 = vld [vmem:[%s4551_s9 + $0x8] sm:$0xff]  }
 0x20c   :  { %2727 = vmatpush1.bf16.msra.mxu0 %v4073_v6  ;;  %v4117_v6 = vld [vmem:[#allocation6 + $0x144] ss:$8 sps:$4 sm:$0xff]   ;;  %3567 = vmatpush3.bf16.msra.mxu1 %v4164_v35 }
 0x20d   :  { %2728 = vmatprep.subr.bf16.mxu0 %v4078_v7  ;;  %v4115_v7 = vld [vmem:[#allocation6 + $0x140] ss:$8 sps:$4 sm:$0xff]   ;;  %3568 = vmatprep.subr.bf16.mxu1 %v4165_v38 }
 0x210   :  { %2729 = vmatpush1.bf16.msra.mxu0 %v4076_v8  ;;  %v4120_v8 = vld [vmem:[#allocation6 + $0x154] ss:$8 sps:$4 sm:$0xff]   ;;  %3569 = vmatpush3.bf16.msra.mxu1 %v4166_v56 }
 0x211   :  { %2730 = vmatprep.subr.bf16.mxu0 %v4081_v9  ;;  %v4118_v9 = vld [vmem:[#allocation6 + $0x150] ss:$8 sps:$4 sm:$0xff]   ;;  %3590 = vmatprep.subr.bf16.mxu1 %v4286_v36 }
 0x214   :  { %2731 = vmatpush1.bf16.msra.mxu0 %v4079_v10  ;;  %v4123_v10 = vld [vmem:[#allocation6 + $0x164] ss:$8 sps:$4 sm:$0xff]  }
 0x215   :  { %2732 = vmatprep.subr.bf16.mxu0 %v4084_v13  ;;  %v4121_v13 = vld [vmem:[#allocation6 + $0x160] ss:$8 sps:$4 sm:$0xff]  }
 0x218   :  { %2733 = vmatpush1.bf16.msra.mxu0 %v4082_v14  ;;  %v4126_v14 = vld [vmem:[#allocation6 + $0x174] ss:$8 sps:$4 sm:$0xff]  }
 0x219   :  { %2734 = vmatprep.subr.bf16.mxu0 %v4087_v15  ;;  %v4124_v15 = vld [vmem:[#allocation6 + $0x170] ss:$8 sps:$4 sm:$0xff]  }
 0x21c   :  { %2735 = vmatpush1.bf16.msra.mxu0 %v4085_v16  ;;  %v4129_v16 = vld [vmem:[#allocation6 + $0x184] ss:$8 sps:$4 sm:$0xff]  }
 0x21d   :  { %2736 = vmatprep.subr.bf16.mxu0 %v4090_v17  ;;  %v4127_v17 = vld [vmem:[#allocation6 + $0x180] ss:$8 sps:$4 sm:$0xff]  }
 0x220   :  { %2737 = vmatpush1.bf16.msra.mxu0 %v4088_v18  ;;  %v4132_v18 = vld [vmem:[#allocation6 + $0x194] ss:$8 sps:$4 sm:$0xff]  }
 0x221   :  { %2738 = vmatprep.subr.bf16.mxu0 %v4093_v19  ;;  %v4130_v19 = vld [vmem:[#allocation6 + $0x190] ss:$8 sps:$4 sm:$0xff]  }
 0x224   :  { %2739 = vmatpush1.bf16.msra.mxu0 %v4091_v20  ;;  %v4135_v20 = vld [vmem:[#allocation6 + $0x1a4] ss:$8 sps:$4 sm:$0xff]  }
 0x225   :  { %2740 = vmatprep.subr.bf16.mxu0 %v4096_v60  ;;  %v4133_v60 = vld [vmem:[#allocation6 + $0x1a0] ss:$8 sps:$4 sm:$0xff]  }
 0x228   :  { %2741 = vmatpush1.bf16.msra.mxu0 %v4094_v21  ;;  %v4138_v21 = vld [vmem:[#allocation6 + $0x1b4] ss:$8 sps:$4 sm:$0xff]  }
 0x229   :  { %2742 = vmatprep.subr.bf16.mxu0 %v4099_v22  ;;  %v4136_v22 = vld [vmem:[#allocation6 + $0x1b0] ss:$8 sps:$4 sm:$0xff]  }
 0x22c   :  { %2743 = vmatpush1.bf16.msra.mxu0 %v4097_v23  ;;  %v4141_v23 = vld [vmem:[#allocation6 + $0x1c4] ss:$8 sps:$4 sm:$0xff]  }
 0x22d   :  { %2744 = vmatprep.subr.bf16.mxu0 %v4102_v24  ;;  %v4139_v24 = vld [vmem:[#allocation6 + $0x1c0] ss:$8 sps:$4 sm:$0xff]  }
 0x230   :  { %2745 = vmatpush1.bf16.msra.mxu0 %v4100_v25  ;;  %v4144_v25 = vld [vmem:[#allocation6 + $0x1d4] ss:$8 sps:$4 sm:$0xff]  }
 0x231   :  { %2755 = vmatprep.subr.bf16.mxu0 %v4105_v26  ;;  %v4142_v26 = vld [vmem:[#allocation6 + $0x1d0] ss:$8 sps:$4 sm:$0xff]  }
 0x2c6   :  { %v2139_v45 = vpop.f32.mrb[0].mxu0  ;;  %v4483_v46 = vpop.f32.mrb[16].mxu1 }
 0x2c7   :  { %v3622_v47 = vadd.f32 %v2139_v45, %v685_v11  ;;  %v2141_v5 = vpop.f32.mrb[1].mxu0  ;;  %v2305_v48 = vpop.f32.mrb[17].mxu1  ;;  %v3624_v29 = vadd.f32 %v4483_v46, %v693_v12  ;;  %v2391_v11 = vrot.slane %v2382_v37, %v4434_v41  ;;  %v4169_v41 = vld [vmem:[%s4551_s9 + $0x10] sm:$0xff]  }
 0x2c8   :  { %v3623_v50 = vadd.f32 %v2141_v5, %v689_v43  ;;  %v3625_v51 = vadd.f32 %v2305_v48, %v697_v44  ;;  %v2143_v52 = vpop.f32.mrb[2].mxu0  ;;  %v2307_v53 = vpop.f32.mrb[18].mxu1 }
 0x2c9   :  { %v2310_v40 = vmax.f32 %v3622_v47, 0.0  ;;  %v2144_v54 = vpop.f32.mrb[3].mxu0  ;;  %v2308_v55 = vpop.f32.mrb[19].mxu1  ;;  %v2312_v32 = vmax.f32 %v3624_v29, 0.0  ;;  %v4167_v52 = vld [vmem:[%s4551_s9] sm:$0xff]  }
 0x2ca   :  { %v2311_v57 = vmax.f32 %v3623_v50, 0.0  ;;  %v2313_v2 = vmax.f32 %v3625_v51, 0.0  ;;  %v4171_v54 = vld [vmem:[%s4551_s9 + $0x20] sm:$0xff]   ;;  %v4172_v55 = vld [vmem:[%s4551_s9 + $0x28] sm:$0xff]  }
 0x2cb   :  { %v2314_v61 = vpack.c.bf16 %v2310_v40, %v2310_v40  ;;  %v2316_v33 = vpack.c.bf16 %v2312_v32, %v2312_v32  ;;  %v4170_v40 = vld [vmem:[%s4551_s9 + $0x18] sm:$0xff]  }
 0x2cc   :  { %v2315_v58 = vpack.c.bf16 %v2311_v57, %v2311_v57  ;;  %v2317_v49 = vpack.c.bf16 %v2313_v2, %v2313_v2  ;;  %v4173_v57 = vld [vmem:[%s4551_s9 + $0x30] sm:$0xff]   ;;  %v4174_v2 = vld [vmem:[%s4551_s9 + $0x38] sm:$0xff]  }
 0x2ce   :  { %2746 = vmatprep.mubr.bf16.mxu0 %v2315_v58 }
 0x2cf   :  { %2747 = vmatmul.mubr.bf16.vlgmr.msra.gmra.mrb[4].mxu0 %v2314_v61 }
 0x2d0   :  { %2756 = vmatpush1.bf16.msra.mxu0 %v4103_v59  ;;  %2787 = vmatprep.mubr.bf16.mxu0 %v2317_v49  ;;  %v3522_v59 = vld [vmem:[%s4550_s8] ss:$0 sm:$0xff] }
 0x2d1   :  { %2757 = vmatprep.subr.bf16.mxu0 %v4108_v62 }
 0x2d4   :  { %2758 = vmatpush1.bf16.msra.mxu0 %v4106_v63 }
 0x2d5   :  { %2759 = vmatprep.subr.bf16.mxu0 %v4111_v0 }
 0x2d8   :  { %2760 = vmatpush1.bf16.msra.mxu0 %v4109_v1 }
 0x2d9   :  { %2761 = vmatprep.subr.bf16.mxu0 %v4114_v3  ;;  %v4175_v3 = vld [vmem:[%s4553_s11] sm:$0xff]  }
 0x2dc   :  { %2762 = vmatpush1.bf16.msra.mxu0 %v4112_v4 }
 0x2dd   :  { %2763 = vmatprep.subr.bf16.mxu0 %v4117_v6  ;;  %v4176_v6 = vld [vmem:[%s4553_s11 + $0x8] sm:$0xff]  }
 0x2e0   :  { %2764 = vmatpush1.bf16.msra.mxu0 %v4115_v7  ;;  %v4177_v7 = vld [vmem:[%s4553_s11 + $0x10] sm:$0xff]  }
 0x2e1   :  { %2765 = vmatprep.subr.bf16.mxu0 %v4120_v8  ;;  %v4178_v8 = vld [vmem:[%s4553_s11 + $0x18] sm:$0xff]  }
 0x2e4   :  { %2766 = vmatpush1.bf16.msra.mxu0 %v4118_v9  ;;  %v3539_v9 = vld [vmem:[%s4552_s10] ss:$0 sm:$0xff] }
 0x2e5   :  { %2767 = vmatprep.subr.bf16.mxu0 %v4123_v10 }
 0x2e8   :  { %2768 = vmatpush1.bf16.msra.mxu0 %v4121_v13 }
 0x2e9   :  { %2769 = vmatprep.subr.bf16.mxu0 %v4126_v14 }
 0x2ec   :  { %2770 = vmatpush1.bf16.msra.mxu0 %v4124_v15 }
 0x2ed   :  { %2771 = vmatprep.subr.bf16.mxu0 %v4129_v16 }
 0x2f0   :  { %2772 = vmatpush1.bf16.msra.mxu0 %v4127_v17 }
 0x2f1   :  { %2773 = vmatprep.subr.bf16.mxu0 %v4132_v18 }
 0x2f4   :  { %2774 = vmatpush1.bf16.msra.mxu0 %v4130_v19  ;;  %v3548_v19 = vld [vmem:[%s4554_s12] ss:$0 sm:$0xff] }
 0x2f5   :  { %2775 = vmatprep.subr.bf16.mxu0 %v4135_v20 }
 0x2f8   :  { %2776 = vmatpush1.bf16.msra.mxu0 %v4133_v60 }
 0x2f9   :  { %2777 = vmatprep.subr.bf16.mxu0 %v4138_v21 }
 0x2fc   :  { %2778 = vmatpush1.bf16.msra.mxu0 %v4136_v22 }
 0x2fd   :  { %2779 = vmatprep.subr.bf16.mxu0 %v4141_v23 }
 0x300   :  { %2780 = vmatpush1.bf16.msra.mxu0 %v4139_v24 }
 0x301   :  { %2781 = vmatprep.subr.bf16.mxu0 %v4144_v25 }
 0x304   :  { %2782 = vmatpush1.bf16.msra.mxu0 %v4142_v26 }
 0x305   :  { %2783 = vmatprep.subr.bf16.mxu0 %v4147_v27 }
 0x308   :  { %2784 = vmatpush1.bf16.msra.mxu0 %v4145_v28 }
 0x309   :  { %2785 = vmatprep.subr.bf16.mxu0 %v4150_v30 }
 0x30c   :  { %2786 = vmatpush1.bf16.msra.mxu0 %v4148_v31 }
 0x30f   :  { %2788 = vmatmul.mubr.bf16.vlgmr.msra.gmra.mrb[4].mxu0 %v2316_v33 }
 0x3e2   :  { %v2789_v43 = vpop.f32.mrb[4].mxu0 }
 0x3e3   :  { %v3626_v44 = vadd.f32 %v2789_v43, %v2387_v42  ;;  %v2791_v45 = vpop.f32.mrb[5].mxu0 }
 0x3e4   :  { %v3627_v46 = vadd.f32 %v2791_v45, %v2391_v11  ;;  %v2793_v47 = vpop.f32.mrb[6].mxu0 }
 0x3e5   :  { %v2796_v5 = vmax.f32 %v3626_v44, 0.0  ;;  %v2794_v48 = vpop.f32.mrb[7].mxu0 }
 0x3e6   :  { %v2797_v50 = vmax.f32 %v3627_v46, 0.0 }
 0x3e7   :  { %v2798_v53 = vpack.c.bf16 %v2796_v5, %v2796_v5 }
 0x3e8   :  { %v2799_v51 = vpack.c.bf16 %v2797_v50, %v2797_v50 }
 0x3ea   :  { %2967 = vmatprep.mubr.bf16.mxu1 %v2799_v51 }
 0x3eb   :  { %2968 = vmatmul.mubr.bf16.vlgmr.msra.gmra.mrb[20].mxu1 %v2798_v53 }
 0x3ec   :  { %3591 = vmatpush3.bf16.msra.mxu1 %v4167_v52  ;;  %3606 = vmatprep.mubr.msk.bf16.mxu1 %vm4287_vm1, %v4286_v36 }
 0x3ed   :  { %3592 = vmatprep.subr.bf16.mxu1 %v4286_v36 }
 0x3f0   :  { %3593 = vmatpush3.bf16.msra.mxu1 %v4168_v39 }
 0x3f1   :  { %3594 = vmatprep.subr.bf16.mxu1 %v4286_v36 }
 0x3f4   :  { %3595 = vmatpush3.bf16.msra.mxu1 %v4169_v41 }
 0x3f5   :  { %3596 = vmatprep.subr.bf16.mxu1 %v4286_v36 }
 0x3f8   :  { %3597 = vmatpush3.bf16.msra.mxu1 %v4170_v40 }
 0x3f9   :  { %3598 = vmatprep.subr.bf16.mxu1 %v4286_v36 }
 0x3fc   :  { %3599 = vmatpush3.bf16.msra.mxu1 %v4171_v54 }
 0x3fd   :  { %3600 = vmatprep.subr.bf16.mxu1 %v4286_v36 }
 0x400   :  { %3601 = vmatpush3.bf16.msra.mxu1 %v4172_v55 }
 0x401   :  { %3602 = vmatprep.subr.bf16.mxu1 %v4286_v36 }
 0x404   :  { %3603 = vmatpush3.bf16.msra.mxu1 %v4173_v57 }
 0x405   :  { %3604 = vmatprep.subr.bf16.mxu1 %v4286_v36 }
 0x408   :  { %3605 = vmatpush3.bf16.msra.mxu1 %v4174_v2 }
 0x409   :  { %3610 = vmatprep.subr.bf16.mxu1 %v4286_v36 }
 0x4be   :  { %v3570_v58 = vpop.f32.mrb[20].mxu1 }
 0x4bf   :  { %v3571_v61 = vpop.f32.mrb[21].mxu1 }
 0x4c0   :  { %v3572_v62 = vadd.f32 %v3571_v61, %v3570_v58  ;;  %v3573_v49 = vpop.f32.mrb[22].mxu1 }
 0x4c1   :  { %v3574_v63 = vpop.f32.mrb[23].mxu1 }
 0x4c2   :  { %v2970_v0 = vadd.f32 %v3572_v62, %v3522_v59 }
 0x4c4   :  { %v2975_v1 = vmax.f32 %v2970_v0, 0.0 }
 0x4c6   :  { %v2976_v4 = vpack.c.bf16 %v2975_v1, %v2975_v1 }
 0x4c8   :  { %3607 = vmatmul.mubr.bf16.vlgmr.msra.gmra.mrb[24].mxu1 %v2976_v4 }
 0x4c9   :  { %3611 = vmatpush3.bf16.msra.mxu1 %v4175_v3  ;;  %3618 = vmatprep.mubr.msk.bf16.mxu1 %vm4287_vm1, %v4286_v36 }
 0x4ca   :  { %3612 = vmatprep.subr.bf16.mxu1 %v4286_v36 }
 0x4cd   :  { %3613 = vmatpush3.bf16.msra.mxu1 %v4176_v6 }
 0x4ce   :  { %3614 = vmatprep.subr.bf16.mxu1 %v4286_v36 }
 0x4d1   :  { %3615 = vmatpush3.bf16.msra.mxu1 %v4177_v7 }
 0x4d2   :  { %3616 = vmatprep.subr.bf16.mxu1 %v4286_v36 }
 0x4d5   :  { %3617 = vmatpush3.bf16.msra.mxu1 %v4178_v8 }
 0x59b   :  { %v3082_v10 = vpop.f32.mrb[24].mxu1 }
 0x59c   :  { %v3083_v13 = vadd.f32 %v3539_v9, %v3082_v10  ;;  %v3608_v14 = vpop.f32.mrb[25].mxu1 }
 0x59d   :  { %v3085_v15 = vpop.f32.mrb[26].mxu1 }
 0x59e   :  { %v3088_v16 = vmax.f32 %v3083_v13, 0.0  ;;  %v3609_v17 = vpop.f32.mrb[27].mxu1 }
 0x5a0   :  { %v3089_v18 = vpack.c.bf16 %v3088_v16, %v3088_v16 }
 0x5a2   :  { %3619 = vmatmul.mubr.msk.bf16.vlgmr.msra.gmra.mrb[28].mxu1 %vm3129_vm2, %v3089_v18 }
 0x675   :  { %v3167_v20 = vpop.f32.mrb[28].mxu1 }
 0x676   :  { %v3168_v60 = vadd.f32 %v3548_v19, %v3167_v20  ;;  %v3620_v21 = vpop.f32.mrb[29].mxu1 }
 0x677   :  { %v3170_v22 = vpop.f32.mrb[30].mxu1 }
 0x678   :  { %3174 = vst.msk [vmem:[%s4555_s13] sm:$0xff] %vm3173_vm3, %v3168_v60  ;;  %v3621_v23 = vpop.f32.mrb[31].mxu1 }
 0x679   :  { %3179 = vsyncpa [#allocation3], 1 }
 0x67a   :  { %3180 = vsyncpa [#allocation5], 1 }
 0x67b   :  { %3181 = vsyncpa [#allocation8], 1 }

</bundles_post_ra>
